<compile_context>
chip_gen: v7x
topology: tpu7x:2x2x1
jax: 0.10.0
libtpu: 0.0.40
codegen_flags: <defaults>
</compile_context>

<pallas_src>
import jax
import jax.numpy as jnp
import numpy as np
from jax.experimental import pallas as pl
from jax.experimental.pallas import tpu as pltpu


# ---------------------------------------------------------------------------
# Host-side (one-time) weight preprocessing
# ---------------------------------------------------------------------------
def _toeplitz_rhs(w, w_in):
    """Pack conv weight (O, C, kh, kw) into per-kernel-row block-Toeplitz RHS.

    Returns T of shape (kh, w_in*C, w_out*O) such that, for an image in
    channels-last 2-D layout A[h, w*C + c]:
        conv_out[h_out, w_out*O + o] = sum_di A[h_out + di, :] @ T[di]
    (valid convolution, stride 1 — identical to torch.nn.Conv2d).
    """
    w = np.asarray(w, dtype=np.float32)
    o_ch, c_ch, kh, kw = w.shape
    w_out = w_in - kw + 1
    t = np.zeros((kh, w_in * c_ch, w_out * o_ch), dtype=np.float32)
    for di in range(kh):
        # band[dj*C + c, o] = w[o, c, di, dj]
        band = np.transpose(w[:, :, di, :], (2, 1, 0)).reshape(kw * c_ch, o_ch)
        for wo in range(w_out):
            t[di, wo * c_ch: wo * c_ch + kw * c_ch, wo * o_ch:(wo + 1) * o_ch] = band
    return t


def _pool_row_matrix(h_in):
    """(h_in//2, h_in) matrix averaging adjacent row pairs (0.5 each)."""
    h_out = h_in // 2
    p = np.zeros((h_out, h_in), dtype=np.float32)
    for h in range(h_out):
        p[h, 2 * h] = 0.5
        p[h, 2 * h + 1] = 0.5
    return p


def _pool_col_matrix(w_in, n_ch):
    """(w_in*C, (w_in//2)*C) matrix averaging adjacent column blocks along W."""
    w_out = w_in // 2
    s = np.zeros((w_in * n_ch, w_out * n_ch), dtype=np.float32)
    for w in range(w_out):
        for t in range(2):
            for c in range(n_ch):
                s[(2 * w + t) * n_ch + c, w * n_ch + c] = 0.5
    return s


def prepare_lenet(params):
    """Pack PyTorch-layout LeNet parameters into kernel-ready constants (host, once)."""
    f32 = np.float32
    consts = {
        # conv1: 32x32xC -> 28x28x6, then 2x2 pool -> 14x14x6
        "t1": _toeplitz_rhs(params["conv1_w"], 32),
        "b1": np.tile(np.asarray(params["conv1_b"], f32), 28)[None, :],
        "p1": _pool_row_matrix(28),
        "s1": _pool_col_matrix(28, 6),
        # conv2: 14x14x6 -> 10x10x16, then 2x2 pool -> 5x5x16
        "t2": _toeplitz_rhs(params["conv2_w"], 14),
        "b2": np.tile(np.asarray(params["conv2_b"], f32), 10)[None, :],
        "p2": _pool_row_matrix(10),
        "s2": _pool_col_matrix(10, 16),
        # conv3: 5x5x16 -> 1x1x120 (GAP over 1x1 is identity)
        "t3": _toeplitz_rhs(params["conv3_w"], 5),
        "b3": np.asarray(params["conv3_b"], f32)[None, :],
        # FC layers, pre-transposed to (K, N)
        "w4": np.asarray(params["lin1_w"], f32).T,
        "b4": np.asarray(params["lin1_b"], f32)[None, :],
        "w5": np.asarray(params["lin2_w"], f32).T,
        "b5": np.asarray(params["lin2_b"], f32)[None, :],
    }
    return {k: jnp.asarray(v) for k, v in consts.items()}


_CONST_ORDER = ("t1", "b1", "p1", "s1", "t2", "b2", "p2", "s2",
                "t3", "b3", "w4", "b4", "w5", "b5")


# ---------------------------------------------------------------------------
# Fused Pallas kernel: one grid step == one image of the batch
# ---------------------------------------------------------------------------
def _lenet_kernel(x_ref, t1_ref, b1_ref, p1_ref, s1_ref,
                  t2_ref, b2_ref, p2_ref, s2_ref,
                  t3_ref, b3_ref, w4_ref, b4_ref, w5_ref, b5_ref, o_ref):
    f32 = jnp.float32

    def mm(a, b):
        return jnp.dot(a, b, preferred_element_type=f32)

    # ---- conv1 + tanh: (32, 32*C) -> (28, 28*6), channels-last 2-D layout ----
    a1 = mm(x_ref[0, 0:28, :], t1_ref[0])
    for di in range(1, 5):
        a1 = a1 + mm(x_ref[0, di:di + 28, :], t1_ref[di])
    z1 = jnp.tanh(a1 + b1_ref[...])
    # 2x2 avg-pool as two matmuls -> (14, 14*6)
    z1 = mm(p1_ref[...], mm(z1, s1_ref[...]))

    # ---- conv2 + tanh: (14, 14*6) -> (10, 10*16) ----
    a2 = mm(z1[0:10, :], t2_ref[0])
    for di in range(1, 5):
        a2 = a2 + mm(z1[di:di + 10, :], t2_ref[di])
    z2 = jnp.tanh(a2 + b2_ref[...])
    # 2x2 avg-pool -> (5, 5*16)
    z2 = mm(p2_ref[...], mm(z2, s2_ref[...]))

    # ---- conv3 + tanh: (5, 5*16) -> (1, 120); GAP over 1x1 spatial = identity ----
    a3 = mm(z2[0:1, :], t3_ref[0])
    for di in range(1, 5):
        a3 = a3 + mm(z2[di:di + 1, :], t3_ref[di])
    z3 = jnp.tanh(a3 + b3_ref[...])

    # ---- fc1 + tanh, fc2, softmax (weights already (K, N)) ----
    h = jnp.tanh(mm(z3, w4_ref[...]) + b4_ref[...])
    logits = mm(h, w5_ref[...]) + b5_ref[...]
    m = jnp.max(logits, axis=-1, keepdims=True)
    e = jnp.exp(logits - m)
    s = jnp.sum(e, axis=-1, keepdims=True)
    r = pl.reciprocal(s, approx=True)
    r = r * (2.0 - s * r)                 # one Newton step -> full f32 accuracy
    o_ref[0] = e * r


def lenet_forward(consts, x):
    """x: (B, C, 32, 32) float -> softmax probabilities (B, out_features)."""
    assert x.shape[2:] == (32, 32), f"x.shape={x.shape!r}"
    batch, c_in = x.shape[0], x.shape[1]
    out_features = consts["b5"].shape[1]

    # Channels-last 2-D image layout: x3d[b, h, w*C + c] = x[b, c, h, w].
    x3d = jnp.transpose(x, (0, 2, 3, 1)).reshape(batch, 32, 32 * c_in)
    x3d = x3d.astype(jnp.float32)

    def resident(a):  # full-array VMEM block, same block index for every grid step
        return pl.BlockSpec(a.shape, lambda b: (0,) * a.ndim)

    const_args = [consts[k] for k in _CONST_ORDER]
    out = pl.pallas_call(
        _lenet_kernel,
        out_shape=jax.ShapeDtypeStruct((batch, 1, out_features), jnp.float32),
        grid=(batch,),
        in_specs=[pl.BlockSpec((1, 32, 32 * c_in), lambda b: (b, 0, 0))]
                 + [resident(a) for a in const_args],
        out_specs=pl.BlockSpec((1, 1, out_features), lambda b: (b, 0, 0)),
        compiler_params=pltpu.CompilerParams(
            dimension_semantics=("parallel",)),
    )(x3d, *const_args)
    return out.reshape(batch, out_features)


# ---------------------------------------------------------------------------
# Parameter init (PyTorch-style uniform) and pure-JAX reference
# ---------------------------------------------------------------------------
def init_lenet_params(key, in_features, out_features):
    def u(key, shape, fan_in):
        bound = 1.0 / float(fan_in) ** 0.5
        return jax.random.uniform(key, shape, jnp.float32, -bound, bound)

    ks = jax.random.split(key, 10)
    return {
        "conv1_w": u(ks[0], (6, in_features, 5, 5), in_features * 25),
        "conv1_b": u(ks[1], (6,), in_features * 25),
        "conv2_w": u(ks[2], (16, 6, 5, 5), 6 * 25),
        "conv2_b": u(ks[3], (16,), 6 * 25),
        "conv3_w": u(ks[4], (120, 16, 5, 5), 16 * 25),
        "conv3_b": u(ks[5], (120,), 16 * 25),
        "lin1_w": u(ks[6], (84, 120), 120),
        "lin1_b": u(ks[7], (84,), 120),
        "lin2_w": u(ks[8], (out_features, 84), 84),
        "lin2_b": u(ks[9], (out_features,), 84),
    }


def _ref_forward(params, x):
    """Pure-JAX reference (for in-script correctness check only)."""
    dn = ("NCHW", "OIHW", "NCHW")

    def conv_tanh(v, w, b):
        y = jax.lax.conv_general_dilated(v, w, (1, 1), "VALID", dimension_numbers=dn)
        return jnp.tanh(y + b[None, :, None, None])

    def pool(v):
        n, c, h, w = v.shape
        return v.reshape(n, c, h // 2, 2, w // 2, 2).mean(axis=(3, 5))

    v = pool(conv_tanh(x, params["conv1_w"], params["conv1_b"]))
    v = pool(conv_tanh(v, params["conv2_w"], params["conv2_b"]))
    v = conv_tanh(v, params["conv3_w"], params["conv3_b"]).mean(axis=(2, 3))
    v = jnp.tanh(v @ params["lin1_w"].T + params["lin1_b"])
    v = v @ params["lin2_w"].T + params["lin2_b"]
    return jax.nn.softmax(v, axis=-1)


if __name__ == "__main__":
    B, in_features, out_features = 2, 3, 10
    key = jax.random.PRNGKey(0)
    k_params, k_x = jax.random.split(key)
    params = init_lenet_params(k_params, in_features, out_features)
    x = jax.random.normal(k_x, (B, in_features, 32, 32), dtype=jnp.float32)

    consts = prepare_lenet(params)            # one-time host-side weight packing
    fwd = jax.jit(lenet_forward)
    out = jax.block_until_ready(fwd(consts, x))

    assert out.shape == (B, out_features), out.shape
    assert bool(jnp.all(jnp.isfinite(out)))
    # softmax rows should sum to ~1
    assert bool(jnp.all(jnp.abs(out.sum(axis=1) - 1.0) < 1e-4))
    # match the pure-JAX reference (f32; tolerance covers MXU pass differences)
    ref = _ref_forward(params, x)
    err = float(jnp.max(jnp.abs(out - ref)))
    assert err < 2e-3, f"max |out - ref| = {err}"
    print("KERNEL_OK")
</pallas_src>

<mosaic_0001>
module attributes {stable_mosaic.version = 11 : i64} {
  func.func @_lenet_kernel(%arg0: i32, %arg1: memref<1x32x96xf32, #tpu.memory_space<vmem>>, %arg2: memref<5x96x168xf32, #tpu.memory_space<vmem>>, %arg3: memref<1x168xf32, #tpu.memory_space<vmem>>, %arg4: memref<14x28xf32, #tpu.memory_space<vmem>>, %arg5: memref<168x84xf32, #tpu.memory_space<vmem>>, %arg6: memref<5x84x160xf32, #tpu.memory_space<vmem>>, %arg7: memref<1x160xf32, #tpu.memory_space<vmem>>, %arg8: memref<5x10xf32, #tpu.memory_space<vmem>>, %arg9: memref<160x80xf32, #tpu.memory_space<vmem>>, %arg10: memref<5x80x120xf32, #tpu.memory_space<vmem>>, %arg11: memref<1x120xf32, #tpu.memory_space<vmem>>, %arg12: memref<120x84xf32, #tpu.memory_space<vmem>>, %arg13: memref<1x84xf32, #tpu.memory_space<vmem>>, %arg14: memref<84x10xf32, #tpu.memory_space<vmem>>, %arg15: memref<1x10xf32, #tpu.memory_space<vmem>>, %arg16: memref<1x1x10xf32, #tpu.memory_space<vmem>>) attributes {dimension_semantics = [#tpu.dimension_semantics<parallel>], iteration_bounds = array<i64: 2>, scalar_prefetch = 0 : i64, scratch_operands = 0 : i64, tpu.core_type = #tpu.core_type<tc>, window_params = [{transform_indices = @transform_0, window_bounds = array<i64: 1, 32, 96>}, {pipeline_mode = #tpu.pipeline_mode<synchronous>, transform_indices = @transform_1, window_bounds = array<i64: 5, 96, 168>}, {pipeline_mode = #tpu.pipeline_mode<synchronous>, transform_indices = @transform_2, window_bounds = array<i64: 1, 168>}, {pipeline_mode = #tpu.pipeline_mode<synchronous>, transform_indices = @transform_3, window_bounds = array<i64: 14, 28>}, {pipeline_mode = #tpu.pipeline_mode<synchronous>, transform_indices = @transform_4, window_bounds = array<i64: 168, 84>}, {pipeline_mode = #tpu.pipeline_mode<synchronous>, transform_indices = @transform_5, window_bounds = array<i64: 5, 84, 160>}, {pipeline_mode = #tpu.pipeline_mode<synchronous>, transform_indices = @transform_6, window_bounds = array<i64: 1, 160>}, {pipeline_mode = #tpu.pipeline_mode<synchronous>, transform_indices = @transform_7, window_bounds = array<i64: 5, 10>}, {pipeline_mode = #tpu.pipeline_mode<synchronous>, transform_indices = @transform_8, window_bounds = array<i64: 160, 80>}, {pipeline_mode = #tpu.pipeline_mode<synchronous>, transform_indices = @transform_9, window_bounds = array<i64: 5, 80, 120>}, {pipeline_mode = #tpu.pipeline_mode<synchronous>, transform_indices = @transform_10, window_bounds = array<i64: 1, 120>}, {pipeline_mode = #tpu.pipeline_mode<synchronous>, transform_indices = @transform_11, window_bounds = array<i64: 120, 84>}, {pipeline_mode = #tpu.pipeline_mode<synchronous>, transform_indices = @transform_12, window_bounds = array<i64: 1, 84>}, {pipeline_mode = #tpu.pipeline_mode<synchronous>, transform_indices = @transform_13, window_bounds = array<i64: 84, 10>}, {pipeline_mode = #tpu.pipeline_mode<synchronous>, transform_indices = @transform_14, window_bounds = array<i64: 1, 10>}, {transform_indices = @transform_15, window_bounds = array<i64: 1, 1, 10>}]} {
    %c0 = arith.constant 0 : index
    %c0_0 = arith.constant 0 : index
    %c0_1 = arith.constant 0 : index
    %0 = vector.load %arg1[%c0, %c0_0, %c0_1] : memref<1x32x96xf32, #tpu.memory_space<vmem>>, vector<1x28x96xf32>
    %1 = vector.shape_cast %0 : vector<1x28x96xf32> to vector<28x96xf32>
    %c0_2 = arith.constant 0 : index
    %c0_3 = arith.constant 0 : index
    %c0_4 = arith.constant 0 : index
    %2 = vector.load %arg2[%c0_2, %c0_3, %c0_4] : memref<5x96x168xf32, #tpu.memory_space<vmem>>, vector<1x96x168xf32>
    %3 = vector.shape_cast %2 : vector<1x96x168xf32> to vector<96x168xf32>
    %cst = arith.constant dense<0.000000e+00> : vector<28x168xf32>
    %4 = tpu.matmul %1, %3, %cst {dimension_numbers = #tpu.dot_dimension_numbers<[1], [0], [0], [1], [0, 0, 1, 1], [], []>} : vector<28x96xf32>, vector<96x168xf32>, vector<28x168xf32> -> vector<28x168xf32>
    %c0_5 = arith.constant 0 : index
    %c1 = arith.constant 1 : index
    %c0_6 = arith.constant 0 : index
    %5 = vector.load %arg1[%c0_5, %c1, %c0_6] : memref<1x32x96xf32, #tpu.memory_space<vmem>>, vector<1x28x96xf32>
    %6 = vector.shape_cast %5 : vector<1x28x96xf32> to vector<28x96xf32>
    %c1_7 = arith.constant 1 : index
    %c0_8 = arith.constant 0 : index
    %c0_9 = arith.constant 0 : index
    %7 = vector.load %arg2[%c1_7, %c0_8, %c0_9] : memref<5x96x168xf32, #tpu.memory_space<vmem>>, vector<1x96x168xf32>
    %8 = vector.shape_cast %7 : vector<1x96x168xf32> to vector<96x168xf32>
    %cst_10 = arith.constant dense<0.000000e+00> : vector<28x168xf32>
    %9 = tpu.matmul %6, %8, %cst_10 {dimension_numbers = #tpu.dot_dimension_numbers<[1], [0], [0], [1], [0, 0, 1, 1], [], []>} : vector<28x96xf32>, vector<96x168xf32>, vector<28x168xf32> -> vector<28x168xf32>
    %10 = arith.addf %4, %9 : vector<28x168xf32>
    %c0_11 = arith.constant 0 : index
    %c2 = arith.constant 2 : index
    %c0_12 = arith.constant 0 : index
    %11 = vector.load %arg1[%c0_11, %c2, %c0_12] : memref<1x32x96xf32, #tpu.memory_space<vmem>>, vector<1x28x96xf32>
    %12 = vector.shape_cast %11 : vector<1x28x96xf32> to vector<28x96xf32>
    %c2_13 = arith.constant 2 : index
    %c0_14 = arith.constant 0 : index
    %c0_15 = arith.constant 0 : index
    %13 = vector.load %arg2[%c2_13, %c0_14, %c0_15] : memref<5x96x168xf32, #tpu.memory_space<vmem>>, vector<1x96x168xf32>
    %14 = vector.shape_cast %13 : vector<1x96x168xf32> to vector<96x168xf32>
    %cst_16 = arith.constant dense<0.000000e+00> : vector<28x168xf32>
    %15 = tpu.matmul %12, %14, %cst_16 {dimension_numbers = #tpu.dot_dimension_numbers<[1], [0], [0], [1], [0, 0, 1, 1], [], []>} : vector<28x96xf32>, vector<96x168xf32>, vector<28x168xf32> -> vector<28x168xf32>
    %16 = arith.addf %10, %15 : vector<28x168xf32>
    %c0_17 = arith.constant 0 : index
    %c3 = arith.constant 3 : index
    %c0_18 = arith.constant 0 : index
    %17 = vector.load %arg1[%c0_17, %c3, %c0_18] : memref<1x32x96xf32, #tpu.memory_space<vmem>>, vector<1x28x96xf32>
    %18 = vector.shape_cast %17 : vector<1x28x96xf32> to vector<28x96xf32>
    %c3_19 = arith.constant 3 : index
    %c0_20 = arith.constant 0 : index
    %c0_21 = arith.constant 0 : index
    %19 = vector.load %arg2[%c3_19, %c0_20, %c0_21] : memref<5x96x168xf32, #tpu.memory_space<vmem>>, vector<1x96x168xf32>
    %20 = vector.shape_cast %19 : vector<1x96x168xf32> to vector<96x168xf32>
    %cst_22 = arith.constant dense<0.000000e+00> : vector<28x168xf32>
    %21 = tpu.matmul %18, %20, %cst_22 {dimension_numbers = #tpu.dot_dimension_numbers<[1], [0], [0], [1], [0, 0, 1, 1], [], []>} : vector<28x96xf32>, vector<96x168xf32>, vector<28x168xf32> -> vector<28x168xf32>
    %22 = arith.addf %16, %21 : vector<28x168xf32>
    %c0_23 = arith.constant 0 : index
    %c4 = arith.constant 4 : index
    %c0_24 = arith.constant 0 : index
    %23 = vector.load %arg1[%c0_23, %c4, %c0_24] : memref<1x32x96xf32, #tpu.memory_space<vmem>>, vector<1x28x96xf32>
    %24 = vector.shape_cast %23 : vector<1x28x96xf32> to vector<28x96xf32>
    %c4_25 = arith.constant 4 : index
    %c0_26 = arith.constant 0 : index
    %c0_27 = arith.constant 0 : index
    %25 = vector.load %arg2[%c4_25, %c0_26, %c0_27] : memref<5x96x168xf32, #tpu.memory_space<vmem>>, vector<1x96x168xf32>
    %26 = vector.shape_cast %25 : vector<1x96x168xf32> to vector<96x168xf32>
    %cst_28 = arith.constant dense<0.000000e+00> : vector<28x168xf32>
    %27 = tpu.matmul %24, %26, %cst_28 {dimension_numbers = #tpu.dot_dimension_numbers<[1], [0], [0], [1], [0, 0, 1, 1], [], []>} : vector<28x96xf32>, vector<96x168xf32>, vector<28x168xf32> -> vector<28x168xf32>
    %28 = arith.addf %22, %27 : vector<28x168xf32>
    %c0_29 = arith.constant 0 : index
    %c0_30 = arith.constant 0 : index
    %29 = vector.load %arg3[%c0_29, %c0_30] : memref<1x168xf32, #tpu.memory_space<vmem>>, vector<1x168xf32>
    %30 = vector.broadcast %29 : vector<1x168xf32> to vector<28x168xf32>
    %31 = arith.addf %28, %30 : vector<28x168xf32>
    %32 = math.tanh %31 : vector<28x168xf32>
    %c0_31 = arith.constant 0 : index
    %c0_32 = arith.constant 0 : index
    %33 = vector.load %arg4[%c0_31, %c0_32] : memref<14x28xf32, #tpu.memory_space<vmem>>, vector<14x28xf32>
    %c0_33 = arith.constant 0 : index
    %c0_34 = arith.constant 0 : index
    %34 = vector.load %arg5[%c0_33, %c0_34] : memref<168x84xf32, #tpu.memory_space<vmem>>, vector<168x84xf32>
    %cst_35 = arith.constant dense<0.000000e+00> : vector<28x84xf32>
    %35 = tpu.matmul %32, %34, %cst_35 {dimension_numbers = #tpu.dot_dimension_numbers<[1], [0], [0], [1], [0, 0, 1, 1], [], []>} : vector<28x168xf32>, vector<168x84xf32>, vector<28x84xf32> -> vector<28x84xf32>
    %cst_36 = arith.constant dense<0.000000e+00> : vector<14x84xf32>
    %36 = tpu.matmul %33, %35, %cst_36 {dimension_numbers = #tpu.dot_dimension_numbers<[1], [0], [0], [1], [0, 0, 1, 1], [], []>} : vector<14x28xf32>, vector<28x84xf32>, vector<14x84xf32> -> vector<14x84xf32>
    %37 = vector.extract_strided_slice %36 {offsets = [0, 0], sizes = [10, 84], strides = [1, 1]} : vector<14x84xf32> to vector<10x84xf32>
    %c0_37 = arith.constant 0 : index
    %c0_38 = arith.constant 0 : index
    %c0_39 = arith.constant 0 : index
    %38 = vector.load %arg6[%c0_37, %c0_38, %c0_39] : memref<5x84x160xf32, #tpu.memory_space<vmem>>, vector<1x84x160xf32>
    %39 = vector.shape_cast %38 : vector<1x84x160xf32> to vector<84x160xf32>
    %cst_40 = arith.constant dense<0.000000e+00> : vector<10x160xf32>
    %40 = tpu.matmul %37, %39, %cst_40 {dimension_numbers = #tpu.dot_dimension_numbers<[1], [0], [0], [1], [0, 0, 1, 1], [], []>} : vector<10x84xf32>, vector<84x160xf32>, vector<10x160xf32> -> vector<10x160xf32>
    %41 = vector.extract_strided_slice %36 {offsets = [1, 0], sizes = [10, 84], strides = [1, 1]} : vector<14x84xf32> to vector<10x84xf32>
    %c1_41 = arith.constant 1 : index
    %c0_42 = arith.constant 0 : index
    %c0_43 = arith.constant 0 : index
    %42 = vector.load %arg6[%c1_41, %c0_42, %c0_43] : memref<5x84x160xf32, #tpu.memory_space<vmem>>, vector<1x84x160xf32>
    %43 = vector.shape_cast %42 : vector<1x84x160xf32> to vector<84x160xf32>
    %cst_44 = arith.constant dense<0.000000e+00> : vector<10x160xf32>
    %44 = tpu.matmul %41, %43, %cst_44 {dimension_numbers = #tpu.dot_dimension_numbers<[1], [0], [0], [1], [0, 0, 1, 1], [], []>} : vector<10x84xf32>, vector<84x160xf32>, vector<10x160xf32> -> vector<10x160xf32>
    %45 = arith.addf %40, %44 : vector<10x160xf32>
    %46 = vector.extract_strided_slice %36 {offsets = [2, 0], sizes = [10, 84], strides = [1, 1]} : vector<14x84xf32> to vector<10x84xf32>
    %c2_45 = arith.constant 2 : index
    %c0_46 = arith.constant 0 : index
    %c0_47 = arith.constant 0 : index
    %47 = vector.load %arg6[%c2_45, %c0_46, %c0_47] : memref<5x84x160xf32, #tpu.memory_space<vmem>>, vector<1x84x160xf32>
    %48 = vector.shape_cast %47 : vector<1x84x160xf32> to vector<84x160xf32>
    %cst_48 = arith.constant dense<0.000000e+00> : vector<10x160xf32>
    %49 = tpu.matmul %46, %48, %cst_48 {dimension_numbers = #tpu.dot_dimension_numbers<[1], [0], [0], [1], [0, 0, 1, 1], [], []>} : vector<10x84xf32>, vector<84x160xf32>, vector<10x160xf32> -> vector<10x160xf32>
    %50 = arith.addf %45, %49 : vector<10x160xf32>
    %51 = vector.extract_strided_slice %36 {offsets = [3, 0], sizes = [10, 84], strides = [1, 1]} : vector<14x84xf32> to vector<10x84xf32>
    %c3_49 = arith.constant 3 : index
    %c0_50 = arith.constant 0 : index
    %c0_51 = arith.constant 0 : index
    %52 = vector.load %arg6[%c3_49, %c0_50, %c0_51] : memref<5x84x160xf32, #tpu.memory_space<vmem>>, vector<1x84x160xf32>
    %53 = vector.shape_cast %52 : vector<1x84x160xf32> to vector<84x160xf32>
    %cst_52 = arith.constant dense<0.000000e+00> : vector<10x160xf32>
    %54 = tpu.matmul %51, %53, %cst_52 {dimension_numbers = #tpu.dot_dimension_numbers<[1], [0], [0], [1], [0, 0, 1, 1], [], []>} : vector<10x84xf32>, vector<84x160xf32>, vector<10x160xf32> -> vector<10x160xf32>
    %55 = arith.addf %50, %54 : vector<10x160xf32>
    %56 = vector.extract_strided_slice %36 {offsets = [4, 0], sizes = [10, 84], strides = [1, 1]} : vector<14x84xf32> to vector<10x84xf32>
    %c4_53 = arith.constant 4 : index
    %c0_54 = arith.constant 0 : index
    %c0_55 = arith.constant 0 : index
    %57 = vector.load %arg6[%c4_53, %c0_54, %c0_55] : memref<5x84x160xf32, #tpu.memory_space<vmem>>, vector<1x84x160xf32>
    %58 = vector.shape_cast %57 : vector<1x84x160xf32> to vector<84x160xf32>
    %cst_56 = arith.constant dense<0.000000e+00> : vector<10x160xf32>
    %59 = tpu.matmul %56, %58, %cst_56 {dimension_numbers = #tpu.dot_dimension_numbers<[1], [0], [0], [1], [0, 0, 1, 1], [], []>} : vector<10x84xf32>, vector<84x160xf32>, vector<10x160xf32> -> vector<10x160xf32>
    %60 = arith.addf %55, %59 : vector<10x160xf32>
    %c0_57 = arith.constant 0 : index
    %c0_58 = arith.constant 0 : index
    %61 = vector.load %arg7[%c0_57, %c0_58] : memref<1x160xf32, #tpu.memory_space<vmem>>, vector<1x160xf32>
    %62 = vector.broadcast %61 : vector<1x160xf32> to vector<10x160xf32>
    %63 = arith.addf %60, %62 : vector<10x160xf32>
    %64 = math.tanh %63 : vector<10x160xf32>
    %c0_59 = arith.constant 0 : index
    %c0_60 = arith.constant 0 : index
    %65 = vector.load %arg8[%c0_59, %c0_60] : memref<5x10xf32, #tpu.memory_space<vmem>>, vector<5x10xf32>
    %c0_61 = arith.constant 0 : index
    %c0_62 = arith.constant 0 : index
    %66 = vector.load %arg9[%c0_61, %c0_62] : memref<160x80xf32, #tpu.memory_space<vmem>>, vector<160x80xf32>
    %cst_63 = arith.constant dense<0.000000e+00> : vector<10x80xf32>
    %67 = tpu.matmul %64, %66, %cst_63 {dimension_numbers = #tpu.dot_dimension_numbers<[1], [0], [0], [1], [0, 0, 1, 1], [], []>} : vector<10x160xf32>, vector<160x80xf32>, vector<10x80xf32> -> vector<10x80xf32>
    %cst_64 = arith.constant dense<0.000000e+00> : vector<5x80xf32>
    %68 = tpu.matmul %65, %67, %cst_64 {dimension_numbers = #tpu.dot_dimension_numbers<[1], [0], [0], [1], [0, 0, 1, 1], [], []>} : vector<5x10xf32>, vector<10x80xf32>, vector<5x80xf32> -> vector<5x80xf32>
    %69 = vector.extract_strided_slice %68 {offsets = [0, 0], sizes = [1, 80], strides = [1, 1]} : vector<5x80xf32> to vector<1x80xf32>
    %c0_65 = arith.constant 0 : index
    %c0_66 = arith.constant 0 : index
    %c0_67 = arith.constant 0 : index
    %70 = vector.load %arg10[%c0_65, %c0_66, %c0_67] : memref<5x80x120xf32, #tpu.memory_space<vmem>>, vector<1x80x120xf32>
    %71 = vector.shape_cast %70 : vector<1x80x120xf32> to vector<80x120xf32>
    %cst_68 = arith.constant dense<0.000000e+00> : vector<1x120xf32>
    %72 = tpu.matmul %69, %71, %cst_68 {dimension_numbers = #tpu.dot_dimension_numbers<[1], [0], [0], [1], [0, 0, 1, 1], [], []>} : vector<1x80xf32>, vector<80x120xf32>, vector<1x120xf32> -> vector<1x120xf32>
    %73 = vector.extract_strided_slice %68 {offsets = [1, 0], sizes = [1, 80], strides = [1, 1]} : vector<5x80xf32> to vector<1x80xf32>
    %c1_69 = arith.constant 1 : index
    %c0_70 = arith.constant 0 : index
    %c0_71 = arith.constant 0 : index
    %74 = vector.load %arg10[%c1_69, %c0_70, %c0_71] : memref<5x80x120xf32, #tpu.memory_space<vmem>>, vector<1x80x120xf32>
    %75 = vector.shape_cast %74 : vector<1x80x120xf32> to vector<80x120xf32>
    %cst_72 = arith.constant dense<0.000000e+00> : vector<1x120xf32>
    %76 = tpu.matmul %73, %75, %cst_72 {dimension_numbers = #tpu.dot_dimension_numbers<[1], [0], [0], [1], [0, 0, 1, 1], [], []>} : vector<1x80xf32>, vector<80x120xf32>, vector<1x120xf32> -> vector<1x120xf32>
    %77 = arith.addf %72, %76 : vector<1x120xf32>
    %78 = vector.extract_strided_slice %68 {offsets = [2, 0], sizes = [1, 80], strides = [1, 1]} : vector<5x80xf32> to vector<1x80xf32>
    %c2_73 = arith.constant 2 : index
    %c0_74 = arith.constant 0 : index
    %c0_75 = arith.constant 0 : index
    %79 = vector.load %arg10[%c2_73, %c0_74, %c0_75] : memref<5x80x120xf32, #tpu.memory_space<vmem>>, vector<1x80x120xf32>
    %80 = vector.shape_cast %79 : vector<1x80x120xf32> to vector<80x120xf32>
    %cst_76 = arith.constant dense<0.000000e+00> : vector<1x120xf32>
    %81 = tpu.matmul %78, %80, %cst_76 {dimension_numbers = #tpu.dot_dimension_numbers<[1], [0], [0], [1], [0, 0, 1, 1], [], []>} : vector<1x80xf32>, vector<80x120xf32>, vector<1x120xf32> -> vector<1x120xf32>
    %82 = arith.addf %77, %81 : vector<1x120xf32>
    %83 = vector.extract_strided_slice %68 {offsets = [3, 0], sizes = [1, 80], strides = [1, 1]} : vector<5x80xf32> to vector<1x80xf32>
    %c3_77 = arith.constant 3 : index
    %c0_78 = arith.constant 0 : index
    %c0_79 = arith.constant 0 : index
    %84 = vector.load %arg10[%c3_77, %c0_78, %c0_79] : memref<5x80x120xf32, #tpu.memory_space<vmem>>, vector<1x80x120xf32>
    %85 = vector.shape_cast %84 : vector<1x80x120xf32> to vector<80x120xf32>
    %cst_80 = arith.constant dense<0.000000e+00> : vector<1x120xf32>
    %86 = tpu.matmul %83, %85, %cst_80 {dimension_numbers = #tpu.dot_dimension_numbers<[1], [0], [0], [1], [0, 0, 1, 1], [], []>} : vector<1x80xf32>, vector<80x120xf32>, vector<1x120xf32> -> vector<1x120xf32>
    %87 = arith.addf %82, %86 : vector<1x120xf32>
    %88 = vector.extract_strided_slice %68 {offsets = [4, 0], sizes = [1, 80], strides = [1, 1]} : vector<5x80xf32> to vector<1x80xf32>
    %c4_81 = arith.constant 4 : index
    %c0_82 = arith.constant 0 : index
    %c0_83 = arith.constant 0 : index
    %89 = vector.load %arg10[%c4_81, %c0_82, %c0_83] : memref<5x80x120xf32, #tpu.memory_space<vmem>>, vector<1x80x120xf32>
    %90 = vector.shape_cast %89 : vector<1x80x120xf32> to vector<80x120xf32>
    %cst_84 = arith.constant dense<0.000000e+00> : vector<1x120xf32>
    %91 = tpu.matmul %88, %90, %cst_84 {dimension_numbers = #tpu.dot_dimension_numbers<[1], [0], [0], [1], [0, 0, 1, 1], [], []>} : vector<1x80xf32>, vector<80x120xf32>, vector<1x120xf32> -> vector<1x120xf32>
    %92 = arith.addf %87, %91 : vector<1x120xf32>
    %c0_85 = arith.constant 0 : index
    %c0_86 = arith.constant 0 : index
    %93 = vector.load %arg11[%c0_85, %c0_86] : memref<1x120xf32, #tpu.memory_space<vmem>>, vector<1x120xf32>
    %94 = arith.addf %92, %93 : vector<1x120xf32>
    %95 = math.tanh %94 : vector<1x120xf32>
    %c0_87 = arith.constant 0 : index
    %c0_88 = arith.constant 0 : index
    %96 = vector.load %arg12[%c0_87, %c0_88] : memref<120x84xf32, #tpu.memory_space<vmem>>, vector<120x84xf32>
    %cst_89 = arith.constant dense<0.000000e+00> : vector<1x84xf32>
    %97 = tpu.matmul %95, %96, %cst_89 {dimension_numbers = #tpu.dot_dimension_numbers<[1], [0], [0], [1], [0, 0, 1, 1], [], []>} : vector<1x120xf32>, vector<120x84xf32>, vector<1x84xf32> -> vector<1x84xf32>
    %c0_90 = arith.constant 0 : index
    %c0_91 = arith.constant 0 : index
    %98 = vector.load %arg13[%c0_90, %c0_91] : memref<1x84xf32, #tpu.memory_space<vmem>>, vector<1x84xf32>
    %99 = arith.addf %97, %98 : vector<1x84xf32>
    %100 = math.tanh %99 : vector<1x84xf32>
    %c0_92 = arith.constant 0 : index
    %c0_93 = arith.constant 0 : index
    %101 = vector.load %arg14[%c0_92, %c0_93] : memref<84x10xf32, #tpu.memory_space<vmem>>, vector<84x10xf32>
    %cst_94 = arith.constant dense<0.000000e+00> : vector<1x10xf32>
    %102 = tpu.matmul %100, %101, %cst_94 {dimension_numbers = #tpu.dot_dimension_numbers<[1], [0], [0], [1], [0, 0, 1, 1], [], []>} : vector<1x84xf32>, vector<84x10xf32>, vector<1x10xf32> -> vector<1x10xf32>
    %c0_95 = arith.constant 0 : index
    %c0_96 = arith.constant 0 : index
    %103 = vector.load %arg15[%c0_95, %c0_96] : memref<1x10xf32, #tpu.memory_space<vmem>>, vector<1x10xf32>
    %104 = arith.addf %102, %103 : vector<1x10xf32>
    %cst_97 = arith.constant dense<0xFF800000> : vector<1xf32>
    %105 = vector.multi_reduction <maximumf>, %104, %cst_97 [1] : vector<1x10xf32> to vector<1xf32>
    %106 = vector.shape_cast %105 : vector<1xf32> to vector<1x1xf32>
    %107 = vector.broadcast %106 : vector<1x1xf32> to vector<1x10xf32>
    %108 = arith.subf %104, %107 : vector<1x10xf32>
    %109 = math.exp %108 : vector<1x10xf32>
    %cst_98 = arith.constant dense<0.000000e+00> : vector<1xf32>
    %110 = vector.multi_reduction <add>, %109, %cst_98 [1] : vector<1x10xf32> to vector<1xf32>
    %111 = vector.shape_cast %110 : vector<1xf32> to vector<1x1xf32>
    %112 = tpu.reciprocal %111 {approx = true} : vector<1x1xf32> -> vector<1x1xf32>
    %113 = arith.mulf %111, %112 : vector<1x1xf32>
    %cst_99 = arith.constant 2.000000e+00 : f32
    %114 = vector.broadcast %cst_99 : f32 to vector<1x1xf32>
    %115 = arith.subf %114, %113 : vector<1x1xf32>
    %116 = arith.mulf %112, %115 : vector<1x1xf32>
    %117 = vector.broadcast %116 : vector<1x1xf32> to vector<1x10xf32>
    %118 = arith.mulf %109, %117 : vector<1x10xf32>
    %c0_100 = arith.constant 0 : index
    %c0_101 = arith.constant 0 : index
    %c0_102 = arith.constant 0 : index
    %119 = vector.load %arg16[%c0_100, %c0_101, %c0_102] : memref<1x1x10xf32, #tpu.memory_space<vmem>>, vector<1x1x10xf32>
    %120 = vector.shape_cast %119 : vector<1x1x10xf32> to vector<1x10xf32>
    %121 = vector.shape_cast %118 : vector<1x10xf32> to vector<1x1x10xf32>
    tpu.vector_store %arg16[%c0_100, %c0_101, %c0_102], %121 {strides = array<i32>} : memref<1x1x10xf32, #tpu.memory_space<vmem>>, vector<1x1x10xf32>,
    return
  }
  func.func @transform_0(%arg0: i32) -> (i32, i32, i32) {
    %c0_i32 = arith.constant 0 : i32
    %c0_i32_0 = arith.constant 0 : i32
    %c0_i32_1 = arith.constant 0 : i32
    return %arg0, %c0_i32, %c0_i32_0 : i32, i32, i32
  }
  func.func @transform_1(%arg0: i32) -> (i32, i32, i32) {
    %c0_i32 = arith.constant 0 : i32
    %c0_i32_0 = arith.constant 0 : i32
    %c0_i32_1 = arith.constant 0 : i32
    %c0_i32_2 = arith.constant 0 : i32
    return %c0_i32, %c0_i32_0, %c0_i32_1 : i32, i32, i32
  }
  func.func @transform_2(%arg0: i32) -> (i32, i32) {
    %c0_i32 = arith.constant 0 : i32
    %c0_i32_0 = arith.constant 0 : i32
    %c0_i32_1 = arith.constant 0 : i32
    return %c0_i32, %c0_i32_0 : i32, i32
  }
  func.func @transform_3(%arg0: i32) -> (i32, i32) {
    %c0_i32 = arith.constant 0 : i32
    %c0_i32_0 = arith.constant 0 : i32
    %c0_i32_1 = arith.constant 0 : i32
    return %c0_i32, %c0_i32_0 : i32, i32
  }
  func.func @transform_4(%arg0: i32) -> (i32, i32) {
    %c0_i32 = arith.constant 0 : i32
    %c0_i32_0 = arith.constant 0 : i32
    %c0_i32_1 = arith.constant 0 : i32
    return %c0_i32, %c0_i32_0 : i32, i32
  }
  func.func @transform_5(%arg0: i32) -> (i32, i32, i32) {
    %c0_i32 = arith.constant 0 : i32
    %c0_i32_0 = arith.constant 0 : i32
    %c0_i32_1 = arith.constant 0 : i32
    %c0_i32_2 = arith.constant 0 : i32
    return %c0_i32, %c0_i32_0, %c0_i32_1 : i32, i32, i32
  }
  func.func @transform_6(%arg0: i32) -> (i32, i32) {
    %c0_i32 = arith.constant 0 : i32
    %c0_i32_0 = arith.constant 0 : i32
    %c0_i32_1 = arith.constant 0 : i32
    return %c0_i32, %c0_i32_0 : i32, i32
  }
  func.func @transform_7(%arg0: i32) -> (i32, i32) {
    %c0_i32 = arith.constant 0 : i32
    %c0_i32_0 = arith.constant 0 : i32
    %c0_i32_1 = arith.constant 0 : i32
    return %c0_i32, %c0_i32_0 : i32, i32
  }
  func.func @transform_8(%arg0: i32) -> (i32, i32) {
    %c0_i32 = arith.constant 0 : i32
    %c0_i32_0 = arith.constant 0 : i32
    %c0_i32_1 = arith.constant 0 : i32
    return %c0_i32, %c0_i32_0 : i32, i32
  }
  func.func @transform_9(%arg0: i32) -> (i32, i32, i32) {
    %c0_i32 = arith.constant 0 : i32
    %c0_i32_0 = arith.constant 0 : i32
    %c0_i32_1 = arith.constant 0 : i32
    %c0_i32_2 = arith.constant 0 : i32
    return %c0_i32, %c0_i32_0, %c0_i32_1 : i32, i32, i32
  }
  func.func @transform_10(%arg0: i32) -> (i32, i32) {
    %c0_i32 = arith.constant 0 : i32
    %c0_i32_0 = arith.constant 0 : i32
    %c0_i32_1 = arith.constant 0 : i32
    return %c0_i32, %c0_i32_0 : i32, i32
  }
  func.func @transform_11(%arg0: i32) -> (i32, i32) {
    %c0_i32 = arith.constant 0 : i32
    %c0_i32_0 = arith.constant 0 : i32
    %c0_i32_1 = arith.constant 0 : i32
    return %c0_i32, %c0_i32_0 : i32, i32
  }
  func.func @transform_12(%arg0: i32) -> (i32, i32) {
    %c0_i32 = arith.constant 0 : i32
    %c0_i32_0 = arith.constant 0 : i32
    %c0_i32_1 = arith.constant 0 : i32
    return %c0_i32, %c0_i32_0 : i32, i32
  }
  func.func @transform_13(%arg0: i32) -> (i32, i32) {
    %c0_i32 = arith.constant 0 : i32
    %c0_i32_0 = arith.constant 0 : i32
    %c0_i32_1 = arith.constant 0 : i32
    return %c0_i32, %c0_i32_0 : i32, i32
  }
  func.func @transform_14(%arg0: i32) -> (i32, i32) {
    %c0_i32 = arith.constant 0 : i32
    %c0_i32_0 = arith.constant 0 : i32
    %c0_i32_1 = arith.constant 0 : i32
    return %c0_i32, %c0_i32_0 : i32, i32
  }
  func.func @transform_15(%arg0: i32) -> (i32, i32, i32) {
    %c0_i32 = arith.constant 0 : i32
    %c0_i32_0 = arith.constant 0 : i32
    %c0_i32_1 = arith.constant 0 : i32
    return %arg0, %c0_i32, %c0_i32_0 : i32, i32, i32
  }
}

</mosaic_0001>

<bundles_post_ra>
// kernel: lenet_forward.1
= control target key start
LH: loop header
LB: loop body
LE: loop exit
PB: predicated region body
PF: predicated region fallthrough
CT: control target
= control target key end

     0   :  { %s5527_s0 = inlined_call_operand.vmem [shape: f32[2,32,96], index: 0, kind: input, shape index: {}]   ;;  %s5528_s1 = inlined_call_operand.vmem [shape: f32[5,96,168], index: 1, kind: input, shape index: {}]   ;;  %s5529_s2 = inlined_call_operand.vmem [shape: f32[1,168], index: 2, kind: input, shape index: {}]   ;;  %s5530_s3 = inlined_call_operand.vmem [shape: f32[14,28], index: 3, kind: input, shape index: {}]   ;;  %s5531_s4 = inlined_call_operand.vmem [shape: f32[168,84], index: 4, kind: input, shape index: {}]   ;;  %s5532_s5 = inlined_call_operand.vmem [shape: f32[5,84,160], index: 5, kind: input, shape index: {}]   ;;  %s5533_s6 = inlined_call_operand.vmem [shape: f32[1,160], index: 6, kind: input, shape index: {}]   ;;  %s5534_s7 = inlined_call_operand.vmem [shape: f32[5,10], index: 7, kind: input, shape index: {}]   ;;  %s5535_s8 = inlined_call_operand.vmem [shape: f32[160,80], index: 8, kind: input, shape index: {}]   ;;  %s5536_s9 = inlined_call_operand.vmem [shape: f32[5,80,120], index: 9, kind: input, shape index: {}]   ;;  %s5537_s10 = inlined_call_operand.vmem [shape: f32[1,120], index: 10, kind: input, shape index: {}]   ;;  %s5538_s11 = inlined_call_operand.vmem [shape: f32[120,84], index: 11, kind: input, shape index: {}]   ;;  %s5539_s12 = inlined_call_operand.vmem [shape: f32[1,84], index: 12, kind: input, shape index: {}]   ;;  %s5540_s13 = inlined_call_operand.vmem [shape: f32[84,10], index: 13, kind: input, shape index: {}]   ;;  %s5541_s14 = inlined_call_operand.vmem [shape: f32[1,10], index: 14, kind: input, shape index: {}]   ;;  %s5542_s15 = inlined_call_operand.hbm [shape: f32[2,1,10], index: 15, kind: output, shape index: {}]  }
   0x1   :  { %5549 = sst [smem:[#allocation11_spill]] %s5527_s0 }
   0x2   :  { %20 = vsyncpa [#allocation3], 0 }
   0x3   :  { %22 = vsyncpa [#allocation3 + $0x1], 0  ;;  %s4123_s18 = smov 0   ;;  %s4125_s19 = smov 0  }
   0x4   :  { %s4127_s20 = smov 0   ;;  %s4129_s21 = smov 0  }
   0x5 LB: > { %5550 = sst [smem:[#allocation5_spill]] %s4024_s18  ;;  %s4144_s22 = sadd.s32 4294967295, %s4036_s21   ;;  %s4036_s21 = sphi %s4129_s21, %s5562_s21   ;;  %s4032_s20 = sphi %s4127_s20, %s5564_s20   ;;  %s4028_s19 = sphi %s4125_s19, %s5566_s19   ;;  %s4024_s18 = sphi %s4123_s18, %s5565_s18  }
   0x6   : > { %5551 = sst [smem:[#allocation6_spill]] %s4032_s20  ;;  %s2870_s23 = sadd.s32 4294967294, %s4036_s21  }
   0x7   : > { %5552 = sst [smem:[#allocation7_spill]] %s4036_s21  ;;  %s4148_s24 = sadd.s32 1, %s4036_s21  }
   0x8   : > { %5553 = sst [smem:[#allocation8_spill]] %s4148_s24  ;;  %s355_s25 = sadd.s32 1, %s4032_s20 }
   0x9   : > { %s352_s26 = ssub.s32 %s4036_s21, %s4148_s24  ;;  %p365_p0 = scmp.ne.s32.totalorder %s4032_s20, %s4028_s19 }
   0xa   : > { %p353_p1 = scmp.eq.s32.totalorder %s352_s26, 0  ;;  %p366_p2 = scmp.eq.s32.totalorder %s4144_s22, 1 }
   0xb   : > { %p371_p3 = scmp.ne.s32.totalorder %s4028_s19, %s4024_s18  ;;  %p372_p4 = scmp.eq.s32.totalorder %s2870_s23, 1 }
   0xc   : > { %s4159_s27 = scalar_select %p353_p1, %s4032_s20, %s355_s25  }
   0xd   : > { %p4161_p5 = por %p366_p2, %p365_p0  ;;  %p4165_p6 = por %p372_p4, %p371_p3 }
   0xe   : > { %5554 = sst [smem:[#allocation9_spill]] %s4159_s27  ;;  %p2873_p7 = scmp.ge.s32.totalorder %s4036_s21, 1 }
   0xf   : > { %s5556_s29 = scalar_select %p4165_p6, 1, 0 }
  0x10   : > { %p440_p8 = scmp.lt.s32.totalorder %s4036_s21, 3 }
  0x11   : > { %5557 = sst [smem:[#allocation10_spill]] %s5556_s29 }
  0x12   : > { %p441_p9 = pnand %p2873_p7, %p440_p8 }
  0x13   : > { %v2877_v0 = vld [vmem:[%s5528_s1 + $0xc8] sm:$0xff] (!%p441_p9)  ;;  %v2879_v1 = vld [vmem:[%s5528_s1 + $0xd8] sm:$0xff] (!%p441_p9)  ;;  %v2876_v2 = vld [vmem:[%s5528_s1 + $0xc0] sm:$0xff] (!%p441_p9)  ;;  %v4038_v7 = vmov (!%p441_p9), 0.0   ;;  %v4039_v21 = vmov (!%p441_p9), 0.0|0.0   ;;  %p487_p10 = scmp.lt.s32.totalorder (!%p441_p9), %s4144_s22, 1 }
  0x14   : > { %444 = sbr.rel (%p441_p9) target bundleno = 2605 (0xa2d), region = 80  ;;  %v3446_v3 = vpack.c.bf16 (!%p441_p9), %v2879_v1, %v2877_v0  ;;  %v2878_v4 = vld [vmem:[%s5528_s1 + $0xd0] sm:$0xff] (!%p441_p9)  ;;  %v2881_v5 = vld [vmem:[%s5528_s1 + $0xe8] sm:$0xff] (!%p441_p9)  ;;  %v2883_v6 = vld [vmem:[%s5528_s1 + $0xf8] sm:$0xff] (!%p441_p9)  ;;  %626 = vmatprep.mubr.f32.mxu0 (!%p441_p9), %v4038_v7  ;;  %3566 = vmatprep.subr.bf16.mxu1 (!%p441_p9), %v4039_v21  ;;  %s5558_s0 = sld [smem:[#allocation11_spill]] (!%p441_p9)  ;;  %vm549_vm0 = vcmask (!%p441_p9), 785408  }
  0x15   : > { %v3448_v8 = vpack.c.bf16 (!%p441_p9), %v2878_v4, %v2876_v2  ;;  %v3450_v9 = vpack.c.bf16 (!%p441_p9), %v2883_v6, %v2881_v5  ;;  %v2880_v10 = vld [vmem:[%s5528_s1 + $0xe0] sm:$0xff] (!%p441_p9)  ;;  %v2882_v11 = vld [vmem:[%s5528_s1 + $0xf0] sm:$0xff] (!%p441_p9)  ;;  %v2885_v12 = vld [vmem:[%s5528_s1 + $0x108] sm:$0xff] (!%p441_p9)  ;;  %vm1217_vm1 = vcmask (!%p441_p9), 326656   ;;  %vm1315_vm2 = vcmask (!%p441_p9), 228352   ;;  %s485_s24 = sand.u32 (!%p441_p9), 1, %s4028_s19  }
  0x16   : > { %3447 = vmatprep.subr.bf16.mxu0 (!%p441_p9), %v3446_v3  ;;  %v2887_v13 = vld [vmem:[%s5528_s1 + $0x118] sm:$0xff] (!%p441_p9)  ;;  %v3452_v14 = vpack.c.bf16 (!%p441_p9), %v2882_v11, %v2880_v10  ;;  %v2884_v16 = vld [vmem:[%s5528_s1 + $0x100] sm:$0xff] (!%p441_p9)  ;;  %v2886_v17 = vld [vmem:[%s5528_s1 + $0x110] sm:$0xff] (!%p441_p9)  ;;  %vm1322_vm3 = vcmask (!%p441_p9), 1043456   ;;  %vm4040_vm4 = vmmov (!%p441_p9), 1   ;;  %vm1448_vm6 = vcmask (!%p441_p9), 1046528  }
  0x17   : > { %3449 = vmatpush1.bf16.msra.mxu0 (!%p441_p9), %v3448_v8  ;;  %v3454_v15 = vpack.c.bf16 (!%p441_p9), %v2887_v13, %v2885_v12  ;;  %v2889_v18 = vld [vmem:[%s5528_s1 + $0x128] sm:$0xff] (!%p441_p9)  ;;  %v2891_v19 = vld [vmem:[%s5528_s1 + $0x138] sm:$0xff] (!%p441_p9)  ;;  %v3456_v20 = vpack.c.bf16 (!%p441_p9), %v2886_v17, %v2884_v16  ;;  %v2888_v23 = vld [vmem:[%s5528_s1 + $0x120] sm:$0xff] (!%p441_p9)  ;;  %vm1452_vm7 = vcmask (!%p441_p9), 687104   ;;  %vm1650_vm8 = vcmask (!%p441_p9), 1045504   ;;  %s3159_s18 = sshll.u32 (!%p441_p9), %s4144_s22, 4 }
  0x18   : > { %3451 = vmatprep.subr.bf16.mxu0 (!%p441_p9), %v3450_v9  ;;  %v3458_v22 = vpack.c.bf16 (!%p441_p9), %v2891_v19, %v2889_v18  ;;  %v2890_v24 = vld [vmem:[%s5528_s1 + $0x130] sm:$0xff] (!%p441_p9)  ;;  %v2893_v25 = vld [vmem:[%s5528_s1 + $0x148] sm:$0xff] (!%p441_p9)  ;;  %v2895_v26 = vld [vmem:[%s5528_s1 + $0x158] sm:$0xff] (!%p441_p9)  ;;  %vm1768_vm9 = vcmask (!%p441_p9), 1044480   ;;  %vm2021_vm10 = vcmask (!%p441_p9), 261120   ;;  %vm4041_vm11 = vmmov (!%p441_p9), 0  }
  0x19   : > { %v3460_v27 = vpack.c.bf16 (!%p441_p9), %v2890_v24, %v2888_v23  ;;  %v3462_v28 = vpack.c.bf16 (!%p441_p9), %v2895_v26, %v2893_v25  ;;  %v2892_v29 = vld [vmem:[%s5528_s1 + $0x140] sm:$0xff] (!%p441_p9)  ;;  %v2894_v30 = vld [vmem:[%s5528_s1 + $0x150] sm:$0xff] (!%p441_p9)  ;;  %v2897_v31 = vld [vmem:[%s5528_s1 + $0x168] sm:$0xff] (!%p441_p9)  ;;  %vm2107_vm12 = vcmask (!%p441_p9), 1041408   ;;  %vm2103_vm14 = vcmask (!%p441_p9), 80896  }
  0x1a   : > { %v2899_v32 = vld [vmem:[%s5528_s1 + $0x178] sm:$0xff] (!%p441_p9)  ;;  %v3464_v33 = vpack.c.bf16 (!%p441_p9), %v2894_v30, %v2892_v29  ;;  %v2896_v35 = vld [vmem:[%s5528_s1 + $0x160] sm:$0xff] (!%p441_p9)  ;;  %v2898_v36 = vld [vmem:[%s5528_s1 + $0x170] sm:$0xff] (!%p441_p9)  ;;  %vm2204_vm15 = vcmask (!%p441_p9), 654336  }
  0x1b   : > { %3453 = vmatpush1.bf16.msra.mxu0 %v3452_v14  ;;  %s488_s30 = scalar_select %p487_p10, %s4144_s22, 1  ;;  %v3466_v34 = vpack.c.bf16 %v2899_v32, %v2897_v31  ;;  %v497_v37 = vld [vmem:[%s5528_s1 + $0x8] sm:$0xff]  ;;  %v499_v38 = vld [vmem:[%s5528_s1 + $0x18] sm:$0xff]  ;;  %v3468_v39 = vpack.c.bf16 %v2898_v36, %v2896_v35  ;;  %v496_v41 = vld [vmem:[%s5528_s1] sm:$0xff] }
  0x1c   : > { %3455 = vmatprep.subr.bf16.mxu0 %v3454_v15  ;;  %v3470_v40 = vpack.c.bf16 %v499_v38, %v497_v37  ;;  %v498_v42 = vld [vmem:[%s5528_s1 + $0x10] sm:$0xff]  ;;  %v501_v43 = vld [vmem:[%s5528_s1 + $0x28] sm:$0xff]  ;;  %v503_v44 = vld [vmem:[%s5528_s1 + $0x38] sm:$0xff]  ;;  %s4042_s22 = smov [#allocation2]  }
  0x1d   : > { %s3162_s25 = sshll.u32 %s488_s30, 5  ;;  %v3472_v46 = vpack.c.bf16 %v498_v42, %v496_v41  ;;  %v3474_v47 = vpack.c.bf16 %v503_v44, %v501_v43  ;;  %v500_v48 = vld [vmem:[%s5528_s1 + $0x20] sm:$0xff]  ;;  %v502_v49 = vld [vmem:[%s5528_s1 + $0x30] sm:$0xff]  ;;  %v505_v50 = vld [vmem:[%s5528_s1 + $0x48] sm:$0xff]  ;;  %s486_s30 = scalar_lea.vmem [#allocation2], %s485_s24 }
  0x1e   : > { %s4256_s17 = scalar_lea.vmem %s5558_s0, %s3162_s25  ;;  %v507_v51 = vld [vmem:[%s5528_s1 + $0x58] sm:$0xff]  ;;  %v3476_v52 = vpack.c.bf16 %v502_v49, %v500_v48  ;;  %v504_v55 = vld [vmem:[%s5528_s1 + $0x40] sm:$0xff]  ;;  %v506_v56 = vld [vmem:[%s5528_s1 + $0x50] sm:$0xff]  ;;  %s2815_s29 = sshll.u32 %s486_s30, 4  ;;  %s5486_s29 = int_to_ptr.vmem [resolvable:$true] %s2815_s29 }
  0x1f   : > { %3457 = vmatpush1.bf16.msra.mxu0 %v3456_v20  ;;  %v520_v45 = vld [vmem:[%s4256_s17 + $0x1] sm:$0xff]  ;;  %v521_v53 = vld [vmem:[%s4256_s17 + $0x9] sm:$0xff]  ;;  %v3478_v54 = vpack.c.bf16 %v507_v51, %v505_v50  ;;  %v511_v58 = vld [vmem:[%s5528_s1 + $0x78] sm:$0xff]  ;;  %v3480_v59 = vpack.c.bf16 %v506_v56, %v504_v55  ;;  %s5484_s0 = scalar_lea.hbm %s5542_s15, %s3159_s18  ;;  %s3974_s16 = scalar_lea.vmem %s5486_s29, 16 }
  0x20   : > { %3459 = vmatprep.subr.bf16.mxu0 %v3458_v22  ;;  %v509_v57 = vld [vmem:[%s5528_s1 + $0x68] sm:$0xff]  ;;  %v522_v60 = vld [vmem:[%s4256_s17 + $0x11] sm:$0xff]  ;;  %v508_v62 = vld [vmem:[%s5528_s1 + $0x60] sm:$0xff]  ;;  %p3975_p11 = scmp.ne.s32.totalorder %s5486_s29, %s3974_s16  ;;  %s3978_s23 = sshll.u32 %s4042_s22, 4  ;;  %s3979_s23 = int_to_ptr.vmem [resolvable:$false] %s3978_s23 }
  0x21   : > { %v3482_v61 = vpack.c.bf16 %v511_v58, %v509_v57  ;;  %v510_v63 = vld [vmem:[%s5528_s1 + $0x70] sm:$0xff]  ;;  %v513_v0 = vld [vmem:[%s5528_s1 + $0x88] sm:$0xff]  ;;  %v515_v1 = vld [vmem:[%s5528_s1 + $0x98] sm:$0xff]  ;;  %s3980_s20 = scalar_lea.vmem %s3979_s23, 32  ;;  %p3981_p0 = scmp.lt.s32.totalorder %s5486_s29, %s3979_s23 }
  0x22   : > { %v3484_v2 = vpack.c.bf16 %v510_v63, %v508_v62  ;;  %v523_v3 = vld [vmem:[%s4256_s17 + $0x19] sm:$0xf]  ;;  %v3486_v4 = vpack.c.bf16 %v515_v1, %v513_v0  ;;  %v512_v5 = vld [vmem:[%s5528_s1 + $0x80] sm:$0xff]  ;;  %v514_v6 = vld [vmem:[%s5528_s1 + $0x90] sm:$0xff]  ;;  %p3976_p12 = pnand %p3975_p11, %p4161_p5  ;;  %p3982_p1 = scmp.lt.s32.totalorder %s3980_s20, %s3974_s16 }
  0x23   : > { %3461 = vmatpush1.bf16.msra.mxu0 %v3460_v27  ;;  %v517_v8 = vld [vmem:[%s5528_s1 + $0xa8] sm:$0xff]  ;;  %v519_v9 = vld [vmem:[%s5528_s1 + $0xb8] sm:$0xff]  ;;  %v3488_v10 = vpack.c.bf16 %v514_v6, %v512_v5  ;;  %v516_v12 = vld [vmem:[%s5528_s1 + $0xa0] sm:$0xff] }
  0x24   : > { %3463 = vmatprep.subr.bf16.mxu0 %v3462_v28  ;;  %v3490_v11 = vpack.c.bf16 %v519_v9, %v517_v8  ;;  %v518_v13 = vld [vmem:[%s5528_s1 + $0xb0] sm:$0xff]  ;;  %v2909_v14 = vld [vmem:[%s5528_s1 + $0x188] sm:$0xff]  ;;  %v2911_v15 = vld [vmem:[%s5528_s1 + $0x198] sm:$0xff]  ;;  %p3977_p13 = pneg %p3976_p12  ;;  %p3983_p2 = por %p3982_p1, %p3981_p0 }
  0x25   : > { %v3492_v16 = vpack.c.bf16 %v518_v13, %v516_v12  ;;  %v3494_v17 = vpack.c.bf16 %v2911_v15, %v2909_v14  ;;  %v2908_v18 = vld [vmem:[%s5528_s1 + $0x180] sm:$0xff]  ;;  %v2910_v19 = vld [vmem:[%s5528_s1 + $0x190] sm:$0xff]  ;;  %v2913_v20 = vld [vmem:[%s5528_s1 + $0x1a8] sm:$0xff] }
  0x26   : > { %v2915_v22 = vld [vmem:[%s5528_s1 + $0x1b8] sm:$0xff]  ;;  %v1196_v23 = vld [vmem:[%s5531_s4] sm:$0xff]  ;;  %v1197_v24 = vld [vmem:[%s5531_s4 + $0x8] sm:$0xff]  ;;  %v3496_v28 = vpack.c.bf16 %v2910_v19, %v2908_v18  ;;  %p3984_p3 = pnand %p3983_p2, %p3977_p13 }
  0x27   : > { %3465 = vmatpush1.bf16.msra.mxu0 %v3464_v33  ;;  %v1198_v25 = vld [vmem:[%s5531_s4 + $0x10] sm:$0xff]  ;;  %v1199_v26 = vld [vmem:[%s5531_s4 + $0x18] sm:$0xff]  ;;  %v492_v27 = vld [vmem:[%s4256_s17] sm:$0xff]  ;;  %v3567_v29 = vpack.c.bf16 %v1197_v24, %v1196_v23  ;;  %v3498_v30 = vpack.c.bf16 %v2915_v22, %v2913_v20 }
  0x28   : > { %3467 = vmatprep.subr.bf16.mxu0 %v3466_v34  ;;  %v2912_v31 = vld [vmem:[%s5528_s1 + $0x1a0] sm:$0xff]  ;;  %v2914_v32 = vld [vmem:[%s5528_s1 + $0x1b0] sm:$0xff]  ;;  %v2917_v33 = vld [vmem:[%s5528_s1 + $0x1c8] sm:$0xff]  ;;  %v3570_v35 = vpack.c.bf16 %v1199_v26, %v1198_v25 }
  0x29   : > { %v2919_v34 = vld [vmem:[%s5528_s1 + $0x1d8] sm:$0xff]  ;;  %3568 = vmatpush1.bf16.msra.mxu1 %v3567_v29  ;;  %v1200_v36 = vld [vmem:[%s5531_s4 + $0x20] sm:$0xff]  ;;  %v1201_v37 = vld [vmem:[%s5531_s4 + $0x28] sm:$0xff]  ;;  %v3500_v38 = vpack.c.bf16 %v2914_v32, %v2912_v31 }
  0x2a   : > { %3569 = vmatprep.subr.bf16.mxu1 %v4039_v21  ;;  %v2916_v41 = vld [vmem:[%s5528_s1 + $0x1c0] sm:$0xff]  ;;  %v2918_v42 = vld [vmem:[%s5528_s1 + $0x1d0] sm:$0xff]  ;;  %v2921_v43 = vld [vmem:[%s5528_s1 + $0x1e8] sm:$0xff] }
  0x2b   : > { %3469 = vmatpush1.bf16.msra.mxu0 %v3468_v39  ;;  %v493_v39 = vld [vmem:[%s4256_s17 + $0x8] sm:$0xff]  ;;  %v2923_v44 = vld [vmem:[%s5528_s1 + $0x1f8] sm:$0xff]  ;;  %v3504_v48 = vpack.c.bf16 %v2918_v42, %v2916_v41  ;;  %v494_v49 = vld [vmem:[%s4256_s17 + $0x10] sm:$0xff] }
  0x2c   : > { %3471 = vmatprep.subr.bf16.mxu0 %v3470_v40  ;;  %v3502_v40 = vpack.c.bf16 %v2919_v34, %v2917_v33  ;;  %v3506_v50 = vpack.c.bf16 %v2923_v44, %v2921_v43  ;;  %v2920_v51 = vld [vmem:[%s5528_s1 + $0x1e0] sm:$0xff]  ;;  %v1205_v57 = vld [vmem:[%s5531_s4 + $0x48] sm:$0xff]  ;;  %v2926_v62 = vld [vmem:[%s5528_s1 + $0x210] sm:$0xff] }
  0x2d   : > { %3571 = vmatpush1.bf16.msra.mxu1 %v3570_v35  ;;  %v1204_v56 = vld [vmem:[%s5531_s4 + $0x40] sm:$0xff]  ;;  %v2929_v63 = vld [vmem:[%s5528_s1 + $0x228] sm:$0xff]  ;;  %v2931_v0 = vld [vmem:[%s5528_s1 + $0x238] sm:$0xff] }
  0x2e   : > { %2900 = vmatmul.mubr.msk.f32.vlgmr.msra.gmra.mrb[0].mxu0 %vm549_vm0, %v520_v45  ;;  %v3573_v45 = vpack.c.bf16 %v1201_v37, %v1200_v36  ;;  %3572 = vmatprep.subr.bf16.mxu1 %v4039_v21  ;;  %v3579_v1 = vpack.c.bf16 %v1205_v57, %v1204_v56  ;;  %v3514_v5 = vpack.c.bf16 %v2931_v0, %v2929_v63  ;;  %v2928_v6 = vld [vmem:[%s5528_s1 + $0x220] sm:$0xff]  ;;  %v2930_v8 = vld [vmem:[%s5528_s1 + $0x230] sm:$0xff]  ;;  %v2937_v9 = vld [vmem:[%s5528_s1 + $0x248] sm:$0xff] }
  0x2f   : > { %3473 = vmatpush1.bf16.msra.mxu0 %v3472_v46  ;;  %632 = vmatprep.mubr.f32.mxu0 %v4038_v7  ;;  %v1202_v46 = vld [vmem:[%s5531_s4 + $0x30] sm:$0xff]  ;;  %v1208_v12 = vld [vmem:[%s5531_s4 + $0x60] sm:$0xff]  ;;  %v1209_v13 = vld [vmem:[%s5531_s4 + $0x68] sm:$0xff]  ;;  %v3516_v14 = vpack.c.bf16 %v2930_v8, %v2928_v6 }
  0x30   : > { %3475 = vmatprep.subr.bf16.mxu0 %v3474_v47  ;;  %v1203_v47 = vld [vmem:[%s5531_s4 + $0x38] sm:$0xff]  ;;  %v2941_v18 = vld [vmem:[%s5528_s1 + $0x268] sm:$0xff]  ;;  %v3585_v20 = vpack.c.bf16 %v1209_v13, %v1208_v12  ;;  %v2940_v25 = vld [vmem:[%s5528_s1 + $0x260] sm:$0xff] }
  0x31   : > { %3574 = vmatpush1.bf16.msra.mxu1 %v3573_v45  ;;  %v3576_v55 = vpack.c.bf16 %v1203_v47, %v1202_v46  ;;  %v2943_v19 = vld [vmem:[%s5528_s1 + $0x278] sm:$0xff]  ;;  %v752_v22 = vld [vmem:[%s4256_s17 + $0x2] sm:$0xff]  ;;  %v2942_v26 = vld [vmem:[%s5528_s1 + $0x270] sm:$0xff] }
  0x32   : > { %2901 = vmatmul.mubr.msk.f32.gmra.mrb[2].mxu0 %vm549_vm0, %v521_v53  ;;  %v2925_v53 = vld [vmem:[%s5528_s1 + $0x208] sm:$0xff]  ;;  %3575 = vmatprep.subr.bf16.mxu1 %v4039_v21  ;;  %v3522_v24 = vpack.c.bf16 %v2943_v19, %v2941_v18  ;;  %v3524_v29 = vpack.c.bf16 %v2942_v26, %v2940_v25  ;;  %v2944_v32 = vld [vmem:[%s5528_s1 + $0x280] sm:$0xff]  ;;  %v2946_v33 = vld [vmem:[%s5528_s1 + $0x290] sm:$0xff] }
  0x33   : > { %3477 = vmatpush1.bf16.msra.mxu0 %v3476_v52  ;;  %638 = vmatprep.mubr.f32.mxu0 %v4038_v7  ;;  %v2922_v52 = vld [vmem:[%s5528_s1 + $0x1f0] sm:$0xff]  ;;  %v2949_v34 = vld [vmem:[%s5528_s1 + $0x2a8] sm:$0xff]  ;;  %v2951_v35 = vld [vmem:[%s5528_s1 + $0x2b8] sm:$0xff]  ;;  %v3528_v36 = vpack.c.bf16 %v2946_v33, %v2944_v32 }
  0x34   : > { %3479 = vmatprep.subr.bf16.mxu0 %v3478_v54  ;;  %v2927_v54 = vld [vmem:[%s5528_s1 + $0x218] sm:$0xff]  ;;  %v3508_v58 = vpack.c.bf16 %v2922_v52, %v2920_v51  ;;  %v2953_v41 = vld [vmem:[%s5528_s1 + $0x2c8] sm:$0xff]  ;;  %v2952_v46 = vld [vmem:[%s5528_s1 + $0x2c0] sm:$0xff] }
  0x35   : > { %3577 = vmatpush1.bf16.msra.mxu1 %v3576_v55  ;;  %v754_v37 = vld [vmem:[%s4256_s17 + $0x12] sm:$0xff]  ;;  %v755_v44 = vld [vmem:[%s4256_s17 + $0x1a] sm:$0xf]  ;;  %v2956_v52 = vld [vmem:[%s5528_s1 + $0x2e0] sm:$0xff] }
  0x36   : > { %2902 = vmatmul.mubr.msk.f32.gmra.mrb[4].mxu0 %vm549_vm0, %v522_v60  ;;  %v3510_v60 = vpack.c.bf16 %v2927_v54, %v2925_v53  ;;  %3578 = vmatprep.subr.bf16.mxu1 %v4039_v21  ;;  %v2955_v42 = vld [vmem:[%s5528_s1 + $0x2d8] sm:$0xff]  ;;  %v2954_v47 = vld [vmem:[%s5528_s1 + $0x2d0] sm:$0xff]  ;;  %v2965_v54 = vld [vmem:[%s5528_s1 + $0x308] sm:$0xff] }
  0x37   : > { %3481 = vmatpush1.bf16.msra.mxu0 %v3480_v59  ;;  %644 = vmatprep.mubr.f32.mxu0 %v4038_v7  ;;  %v495_v59 = vld [vmem:[%s4256_s17 + $0x18] sm:$0xf]  ;;  %v3534_v45 = vpack.c.bf16 %v2955_v42, %v2953_v41  ;;  %v2958_v53 = vld [vmem:[%s5528_s1 + $0x2f0] sm:$0xff]  ;;  %v2981_v18 = vld [vmem:[%s5528_s1 + $0x388] sm:$0xff] }
  0x38   : > { %3483 = vmatprep.subr.bf16.mxu0 %v3482_v61  ;;  %v2924_v61 = vld [vmem:[%s5528_s1 + $0x200] sm:$0xff]  ;;  %v2967_v55 = vld [vmem:[%s5528_s1 + $0x318] sm:$0xff]  ;;  %v3540_v56 = vpack.c.bf16 %v2958_v53, %v2956_v52  ;;  %v891_v6 = vld [vmem:[%s4256_s17 + $0xb] sm:$0xff] }
  0x39   : > { %3580 = vmatpush1.bf16.msra.mxu1 %v3579_v1  ;;  %v3542_v57 = vpack.c.bf16 %v2967_v55, %v2965_v54  ;;  %v2968_v1 = vld [vmem:[%s5528_s1 + $0x320] sm:$0xff]  ;;  %v2979_v12 = vld [vmem:[%s5528_s1 + $0x378] sm:$0xff]  ;;  %v2982_v25 = vld [vmem:[%s5528_s1 + $0x390] sm:$0xff] }
  0x3a   : > { %2903 = vmatmul.mubr.msk.f32.gmra.mrb[6].mxu0 %vm549_vm0, %v523_v3  ;;  %v1207_v3 = vld [vmem:[%s5531_s4 + $0x58] sm:$0xff]  ;;  %3581 = vmatprep.subr.bf16.mxu1 %v4039_v21  ;;  %v2985_v26 = vld [vmem:[%s5528_s1 + $0x3a8] sm:$0xff]  ;;  %vm3601_vm5 = vmpackc.low %vm1322_vm3, %vm4040_vm4 }
  0x3b   : > { %3485 = vmatpush1.bf16.msra.mxu0 %v3484_v2  ;;  %727 = vmatprep.mubr.f32.mxu0 %v4038_v7  ;;  %v1206_v2 = vld [vmem:[%s5531_s4 + $0x50] sm:$0xff]  ;;  %v2983_v19 = vld [vmem:[%s5528_s1 + $0x398] sm:$0xff]  ;;  %v1028_v33 = vld [vmem:[%s4256_s17 + $0x4] sm:$0xff] }
  0x3c   : > { %3487 = vmatprep.subr.bf16.mxu0 %v3486_v4  ;;  %v3512_v4 = vpack.c.bf16 %v2926_v62, %v2924_v61  ;;  %v2971_v61 = vld [vmem:[%s5528_s1 + $0x338] sm:$0xff]  ;;  %v890_v62 = vld [vmem:[%s4256_s17 + $0x3] sm:$0xff]  ;;  %vm3738_vm13 = vmpackc.low %vm2107_vm12, %vm4040_vm4 }
  0x3d   : > { %v1213_v41 = vld [vmem:[%s5531_s4 + $0x88] sm:$0xff] }
  0x3f   : > { %3489 = vmatpush1.bf16.msra.mxu0 %v3488_v10  ;;  %v2939_v10 = vld [vmem:[%s5528_s1 + $0x258] sm:$0xff] }
  0x40   : > { %3491 = vmatprep.subr.bf16.mxu0 %v3490_v11  ;;  %v3582_v11 = vpack.c.bf16 %v1207_v3, %v1206_v2  ;;  %v3518_v15 = vpack.c.bf16 %v2939_v10, %v2937_v9  ;;  %v2970_v2 = vld [vmem:[%s5528_s1 + $0x330] sm:$0xff]  ;;  %v2973_v3 = vld [vmem:[%s5528_s1 + $0x348] sm:$0xff]  ;;  %v2972_v9 = vld [vmem:[%s5528_s1 + $0x340] sm:$0xff] }
  0x41   : > { %v2974_v10 = vld [vmem:[%s5528_s1 + $0x350] sm:$0xff] }
  0x42   : > { %3583 = vmatpush1.bf16.msra.mxu1 %v3582_v11  ;;  %v2977_v11 = vld [vmem:[%s5528_s1 + $0x368] sm:$0xff]  ;;  %v3552_v13 = vpack.c.bf16 %v2974_v10, %v2972_v9 }
  0x43   : > { %3493 = vmatpush1.bf16.msra.mxu0 %v3492_v16  ;;  %v2936_v16 = vld [vmem:[%s5528_s1 + $0x240] sm:$0xff]  ;;  %3584 = vmatprep.subr.bf16.mxu1 %v4039_v21 }
  0x44   : > { %3495 = vmatprep.subr.bf16.mxu0 %v3494_v17  ;;  %v2938_v17 = vld [vmem:[%s5528_s1 + $0x250] sm:$0xff] }
  0x45   : > { %v3520_v23 = vpack.c.bf16 %v2938_v17, %v2936_v16  ;;  %v2976_v16 = vld [vmem:[%s5528_s1 + $0x360] sm:$0xff]  ;;  %v2978_v17 = vld [vmem:[%s5528_s1 + $0x370] sm:$0xff] }
  0x46   : > { %2904 = vmatmul.mubr.msk.f32.vlgmr.msra.gmra.mrb[0].mxu0 %vm549_vm0, %v492_v27  ;;  %v2945_v27 = vld [vmem:[%s5528_s1 + $0x288] sm:$0xff]  ;;  %3586 = vmatpush1.bf16.msra.mxu1 %v3585_v20  ;;  %v3556_v20 = vpack.c.bf16 %v2978_v17, %v2976_v16 }
  0x47   : > { %3497 = vmatpush1.bf16.msra.mxu0 %v3496_v28  ;;  %733 = vmatprep.mubr.f32.mxu0 %v4038_v7  ;;  %v2947_v28 = vld [vmem:[%s5528_s1 + $0x298] sm:$0xff] }
  0x48   : > { %3499 = vmatprep.subr.bf16.mxu0 %v3498_v30  ;;  %3587 = vmatprep.subr.bf16.mxu1 %v4039_v21  ;;  %v753_v30 = vld [vmem:[%s4256_s17 + $0xa] sm:$0xff]  ;;  %v3526_v31 = vpack.c.bf16 %v2947_v28, %v2945_v27  ;;  %v2987_v27 = vld [vmem:[%s5528_s1 + $0x3b8] sm:$0xff] }
  0x4a   : > { %2905 = vmatmul.mubr.msk.f32.gmra.mrb[2].mxu0 %vm549_vm0, %v493_v39  ;;  %v2948_v39 = vld [vmem:[%s5528_s1 + $0x2a0] sm:$0xff] }
  0x4b   : > { %3501 = vmatpush1.bf16.msra.mxu0 %v3500_v38  ;;  %739 = vmatprep.mubr.f32.mxu0 %v4038_v7  ;;  %v3530_v38 = vpack.c.bf16 %v2951_v35, %v2949_v34  ;;  %v1029_v34 = vld [vmem:[%s4256_s17 + $0xc] sm:$0xff]  ;;  %v1030_v35 = vld [vmem:[%s4256_s17 + $0x14] sm:$0xff] }
  0x4c   : > { %3503 = vmatprep.subr.bf16.mxu0 %v3502_v40  ;;  %v2950_v40 = vld [vmem:[%s5528_s1 + $0x2b0] sm:$0xff] }
  0x4d   : > { %v3532_v43 = vpack.c.bf16 %v2950_v40, %v2948_v39  ;;  %v1212_v40 = vld [vmem:[%s5531_s4 + $0x80] sm:$0xff] }
  0x4e   : > { %2906 = vmatmul.mubr.msk.f32.gmra.mrb[4].mxu0 %vm549_vm0, %v494_v49  ;;  %v2959_v49 = vld [vmem:[%s5528_s1 + $0x2f8] sm:$0xff]  ;;  %v3591_v42 = vpack.c.bf16 %v1213_v41, %v1212_v40  ;;  %v3010_v40 = vld [vmem:[%s5532_s5 + $0x108] sm:$0xff] }
  0x4f   : > { %3505 = vmatpush1.bf16.msra.mxu0 %v3504_v48  ;;  %745 = vmatprep.mubr.f32.mxu0 %v4038_v7  ;;  %v2957_v48 = vld [vmem:[%s5528_s1 + $0x2e8] sm:$0xff] }
  0x50   : > { %3507 = vmatprep.subr.bf16.mxu0 %v3506_v50  ;;  %v3536_v50 = vpack.c.bf16 %v2954_v47, %v2952_v46  ;;  %v3538_v51 = vpack.c.bf16 %v2959_v49, %v2957_v48  ;;  %v1216_v46 = vld [vmem:[%s5531_s4 + $0xa0] sm:$0xff]  ;;  %v1168_v47 = vlaneseq }
  0x52   : > { %2907 = vmatmul.mubr.msk.f32.gmra.mrb[6].mxu0 %vm549_vm0, %v495_v59  ;;  %v2966_v59 = vld [vmem:[%s5528_s1 + $0x310] sm:$0xff]  ;;  %v4673_v48 = vshrl.u32 %v1168_v47, 7 }
  0x53   : > { %3509 = vmatpush1.bf16.msra.mxu0 %v3508_v58  ;;  %857 = vmatprep.mubr.f32.mxu0 %v4038_v7  ;;  %v2964_v58 = vld [vmem:[%s5528_s1 + $0x300] sm:$0xff] }
  0x54   : > { %3511 = vmatprep.subr.bf16.mxu0 %v3510_v60  ;;  %v2969_v60 = vld [vmem:[%s5528_s1 + $0x328] sm:$0xff]  ;;  %v3544_v63 = vpack.c.bf16 %v2966_v59, %v2964_v58  ;;  %v1170_v49 = vsub.s32 0, %v4673_v48 }
  0x55   : > { %v3546_v0 = vpack.c.bf16 %v2971_v61, %v2969_v60 }
  0x57   : > { %3513 = vmatpush1.bf16.msra.mxu0 %v3512_v4  ;;  %v2975_v4 = vld [vmem:[%s5528_s1 + $0x358] sm:$0xff] }
  0x58   : > { %3515 = vmatprep.subr.bf16.mxu0 %v3514_v5  ;;  %v3548_v5 = vpack.c.bf16 %v2970_v2, %v2968_v1  ;;  %v3550_v8 = vpack.c.bf16 %v2975_v4, %v2973_v3 }
  0x5b   : > { %3517 = vmatpush1.bf16.msra.mxu0 %v3516_v14  ;;  %v892_v14 = vld [vmem:[%s4256_s17 + $0x13] sm:$0xff] }
  0x5c   : > { %3519 = vmatprep.subr.bf16.mxu0 %v3518_v15  ;;  %v3554_v15 = vpack.c.bf16 %v2979_v12, %v2977_v11 }
  0x5e   : > { %2932 = vmatmul.mubr.msk.f32.vlgmr.msra.gmra.mrb[0].mxu0 %vm549_vm0, %v752_v22  ;;  %v893_v22 = vld [vmem:[%s4256_s17 + $0x1b] sm:$0xf] }
  0x5f   : > { %3521 = vmatpush1.bf16.msra.mxu0 %v3520_v23  ;;  %863 = vmatprep.mubr.f32.mxu0 %v4038_v7  ;;  %v3558_v23 = vpack.c.bf16 %v2983_v19, %v2981_v18 }
  0x60   : > { %3523 = vmatprep.subr.bf16.mxu0 %v3522_v24  ;;  %v2980_v24 = vld [vmem:[%s5528_s1 + $0x380] sm:$0xff] }
  0x61   : > { %v3560_v28 = vpack.c.bf16 %v2982_v25, %v2980_v24  ;;  %v3000_v24 = vld [vmem:[%s5532_s5 + $0xb8] sm:$0xff]  ;;  %v3002_v25 = vld [vmem:[%s5532_s5 + $0xc8] sm:$0xff] }
  0x62   : > { %2933 = vmatmul.mubr.msk.f32.gmra.mrb[2].mxu0 %vm549_vm0, %v753_v30  ;;  %v2984_v30 = vld [vmem:[%s5528_s1 + $0x3a0] sm:$0xff] }
  0x63   : > { %3525 = vmatpush1.bf16.msra.mxu0 %v3524_v29  ;;  %869 = vmatprep.mubr.f32.mxu0 %v4038_v7  ;;  %v3562_v29 = vpack.c.bf16 %v2987_v27, %v2985_v26 }
  0x64   : > { %3527 = vmatprep.subr.bf16.mxu0 %v3526_v31  ;;  %v2986_v31 = vld [vmem:[%s5528_s1 + $0x3b0] sm:$0xff] }
  0x65   : > { %v3564_v32 = vpack.c.bf16 %v2986_v31, %v2984_v30  ;;  %v2999_v30 = vld [vmem:[%s5532_s5 + $0xb0] sm:$0xff]  ;;  %v3001_v31 = vld [vmem:[%s5532_s5 + $0xc0] sm:$0xff] }
  0x66   : > { %2934 = vmatmul.mubr.msk.f32.gmra.mrb[4].mxu0 %vm549_vm0, %v754_v37  ;;  %v1210_v37 = vld [vmem:[%s5531_s4 + $0x70] sm:$0xff] }
  0x67   : > { %3529 = vmatpush1.bf16.msra.mxu0 %v3528_v36  ;;  %875 = vmatprep.mubr.f32.mxu0 %v4038_v7  ;;  %v1031_v36 = vld [vmem:[%s4256_s17 + $0x1c] sm:$0xf]  ;;  %s2803_s17 = scalar_lea.sflag [#allocation3], %s485_s24 }
  0x68   : > { %3531 = vmatprep.subr.bf16.mxu0 %v3530_v38  ;;  %v1211_v38 = vld [vmem:[%s5531_s4 + $0x78] sm:$0xff] }
  0x69   : > { %v3588_v39 = vpack.c.bf16 %v1211_v38, %v1210_v37  ;;  %v3003_v37 = vld [vmem:[%s5532_s5 + $0xd0] sm:$0xff]  ;;  %v3005_v38 = vld [vmem:[%s5532_s5 + $0xe0] sm:$0xff] }
  0x6a   : > { %2935 = vmatmul.mubr.msk.f32.gmra.mrb[6].mxu0 %vm549_vm0, %v755_v44  ;;  %v1215_v44 = vld [vmem:[%s5531_s4 + $0x98] sm:$0xff]  ;;  %v3612_v41 = vpack.c.bf16 %v3005_v38, %v3003_v37  ;;  %v1405_v38 = vld [vmem:[%s5532_s5 + $0x20] sm:$0xff] }
  0x6b   : > { %3533 = vmatpush1.bf16.msra.mxu0 %v3532_v43  ;;  %995 = vmatprep.mubr.f32.mxu0 %v4038_v7  ;;  %v1214_v43 = vld [vmem:[%s5531_s4 + $0x90] sm:$0xff] }
  0x6c   : > { %3535 = vmatprep.subr.bf16.mxu0 %v3534_v45  ;;  %3589 = vmatpush1.bf16.msra.mxu1 %v3588_v39  ;;  %v3594_v45 = vpack.c.bf16 %v1215_v44, %v1214_v43  ;;  %v3008_v39 = vld [vmem:[%s5532_s5 + $0xf8] sm:$0xff]  ;;  %v3007_v43 = vld [vmem:[%s5532_s5 + $0xf0] sm:$0xff]  ;;  %v3009_v44 = vld [vmem:[%s5532_s5 + $0x100] sm:$0xff] }
  0x6d   : > { %3590 = vmatprep.subr.bf16.mxu1 %v4039_v21  ;;  %v3616_v47 = vpack.c.bf16 %v3009_v44, %v3007_v43 }
  0x6f   : > { %3537 = vmatpush1.bf16.msra.mxu0 %v3536_v50  ;;  %v1166_v50 = vld [vmem:[%s5529_s2] sm:$0x3] }
  0x70   : > { %3539 = vmatprep.subr.bf16.mxu0 %v3538_v51  ;;  %3592 = vmatpush1.bf16.msra.mxu1 %v3591_v42  ;;  %v1174_v51 = vsub.s32 1, %v4673_v48  ;;  %v1171_v52 = vrot.slane %v1166_v50, %v1170_v49  ;;  %v3614_v42 = vpack.c.bf16 %v3010_v40, %v3008_v39  ;;  %v1407_v39 = vld [vmem:[%s5532_s5 + $0x30] sm:$0xff] }
  0x71   : > { %3593 = vmatprep.subr.bf16.mxu1 %v4039_v21 }
  0x72   : > { %v1175_v53 = vrot.slane %v1166_v50, %v1174_v51 }
  0x73   : > { %3541 = vmatpush1.bf16.msra.mxu0 %v3540_v56 }
  0x74   : > { %3543 = vmatprep.subr.bf16.mxu0 %v3542_v57  ;;  %3595 = vmatpush1.bf16.msra.mxu1 %v3594_v45  ;;  %v3012_v45 = vld [vmem:[%s5532_s5 + $0x118] sm:$0xff] }
  0x75   : > { %1270 = vmatprep.subr.mxu1 %v4038_v7 }
  0x76   : > { %2960 = vmatmul.mubr.msk.f32.vlgmr.msra.gmra.mrb[0].mxu0 %vm549_vm0, %v890_v62 }
  0x77   : > { %3545 = vmatpush1.bf16.msra.mxu0 %v3544_v63  ;;  %1001 = vmatprep.mubr.f32.mxu0 %v4038_v7 }
  0x78   : > { %3547 = vmatprep.subr.bf16.mxu0 %v3546_v0  ;;  %1271 = vmatpush1.msra.mxu1 %v1216_v46  ;;  %v3014_v46 = vld [vmem:[%s5532_s5 + $0x128] sm:$0xff] }
  0x79   : > { %v3618_v50 = vpack.c.bf16 %v3014_v46, %v3012_v45  ;;  %v3632_v46 = vpack.c.bf16 %v1407_v39, %v1405_v38  ;;  %v3047_v38 = vld [vmem:[%s5532_s5 + $0x1f0] sm:$0xff] }
  0x7a   : > { %2961 = vmatmul.mubr.msk.f32.gmra.mrb[2].mxu0 %vm549_vm0, %v891_v6 }
  0x7b   : > { %3549 = vmatpush1.bf16.msra.mxu0 %v3548_v5  ;;  %1007 = vmatprep.mubr.f32.mxu0 %v4038_v7 }
  0x7c   : > { %3551 = vmatprep.subr.bf16.mxu0 %v3550_v8 }
  0x7e   : > { %2962 = vmatmul.mubr.msk.f32.gmra.mrb[4].mxu0 %vm549_vm0, %v892_v14 }
  0x7f   : > { %3553 = vmatpush1.bf16.msra.mxu0 %v3552_v13  ;;  %1013 = vmatprep.mubr.f32.mxu0 %v4038_v7 }
  0x80   : > { %3555 = vmatprep.subr.bf16.mxu0 %v3554_v15  ;;  %v1194_v15 = vld [vmem:[%s5530_s3] sm:$0xff] }
  0x82   : > { %2963 = vmatmul.mubr.msk.f32.gmra.mrb[6].mxu0 %vm549_vm0, %v893_v22 }
  0x83   : > { %3557 = vmatpush1.bf16.msra.mxu0 %v3556_v20  ;;  %1133 = vmatprep.mubr.f32.mxu0 %v4038_v7 }
  0x84   : > { %3559 = vmatprep.subr.bf16.mxu0 %v3558_v23 }
  0x87   : > { %3561 = vmatpush1.bf16.msra.mxu0 %v3560_v28 }
  0x88   : > { %3563 = vmatprep.subr.bf16.mxu0 %v3562_v29  ;;  %v3606_v29 = vpack.c.bf16 %v3002_v25, %v3000_v24 }
  0x8b   : > { %3565 = vmatpush1.bf16.msra.mxu0 %v3564_v32  ;;  %v3004_v32 = vld [vmem:[%s5532_s5 + $0xd8] sm:$0xff] }
  0x8c   : > { %3706 = vmatprep.subr.bf16.mxu0 %v4039_v21 }
  0x8e   : > { %2988 = vmatmul.mubr.msk.f32.vlgmr.msra.gmra.mrb[0].mxu0 %vm549_vm0, %v1028_v33  ;;  %v3006_v33 = vld [vmem:[%s5532_s5 + $0xe8] sm:$0xff] }
  0x8f   : > { %1139 = vmatprep.mubr.f32.mxu0 %v4038_v7 }
  0x92   : > { %2989 = vmatmul.mubr.msk.f32.gmra.mrb[2].mxu0 %vm549_vm0, %v1029_v34  ;;  %v1195_v34 = vld [vmem:[%s5530_s3 + $0x8] sm:$0x3f] }
  0x93   : > { %1145 = vmatprep.mubr.f32.mxu0 %v4038_v7 }
  0x96   : > { %2990 = vmatmul.mubr.msk.f32.gmra.mrb[4].mxu0 %vm549_vm0, %v1030_v35  ;;  %v3608_v35 = vpack.c.bf16 %v3001_v31, %v2999_v30 }
  0x97   : > { %1151 = vmatprep.mubr.f32.mxu0 %v4038_v7 }
  0x9a   : > { %2991 = vmatmul.mubr.msk.f32.gmra.mrb[6].mxu0 %vm549_vm0, %v1031_v36  ;;  %v3610_v36 = vpack.c.bf16 %v3006_v33, %v3004_v32  ;;  %vm2623_vm0 = vcmask 982016  }
 0x161   : > { %v1135_v54 = vpop.f32.mrb[0].mxu0 }
 0x162   : > { %v1178_v55 = vadd.f32 %v1171_v52, %v1135_v54  ;;  %v1137_v56 = vpop.f32.mrb[1].mxu0  ;;  %v3016_v54 = vld [vmem:[%s5532_s5 + $0x138] sm:$0xff] }
 0x163   : > { %v1179_v57 = vadd.f32 %v1175_v53, %v1137_v56 }
 0x165   : > { %3942 = vtanh.f32 %v1179_v57  ;;  %v1141_v58 = vpop.f32.mrb[2].mxu0 }
 0x166   : > { %3944 = vtanh.f32 %v1178_v55  ;;  %v1180_v59 = vadd.f32 %v1171_v52, %v1141_v58  ;;  %v1143_v60 = vpop.f32.mrb[3].mxu0  ;;  %v3018_v55 = vld [vmem:[%s5532_s5 + $0x148] sm:$0xff]  ;;  %v3015_v58 = vld [vmem:[%s5532_s5 + $0x130] sm:$0xff] }
 0x167   : > { %v1181_v61 = vadd.f32 %v1175_v53, %v1143_v60  ;;  %v3622_v57 = vpack.c.bf16 %v3018_v55, %v3016_v54  ;;  %v1416_v54 = vld [vmem:[%s5532_s5 + $0x78] sm:$0xff] }
 0x169   : > { %3946 = vtanh.f32 %v1181_v61  ;;  %v1147_v62 = vpop.f32.mrb[4].mxu0  ;;  %v3020_v61 = vld [vmem:[%s5532_s5 + $0x158] sm:$0xf] }
 0x16a   : > { %3948 = vtanh.f32 %v1180_v59  ;;  %v1182_v63 = vadd.f32 %v1171_v52, %v1147_v62  ;;  %v1149_v0 = vpop.f32.mrb[5].mxu0  ;;  %v3017_v59 = vld [vmem:[%s5532_s5 + $0x140] sm:$0xff]  ;;  %v1402_v62 = vld [vmem:[%s5532_s5 + $0x8] sm:$0xff] }
 0x16b   : > { %v1183_v1 = vadd.f32 %v1175_v53, %v1149_v0  ;;  %v3624_v60 = vpack.c.bf16 %v3017_v59, %v3015_v58  ;;  %v3019_v0 = vld [vmem:[%s5532_s5 + $0x150] sm:$0xf]  ;;  %v1418_v59 = vld [vmem:[%s5532_s5 + $0x88] sm:$0xff] }
 0x16c   : > { %v1415_v58 = vld [vmem:[%s5532_s5 + $0x70] sm:$0xff] }
 0x16d   : > { %3950 = vtanh.f32 %v1183_v1  ;;  %v1153_v2 = vpop.f32.mrb[6].mxu0 }
 0x16e   : > { %3952 = vtanh.f32 %v1182_v63  ;;  %v1184_v3 = vadd.f32 %v1171_v52, %v1153_v2  ;;  %v1155_v4 = vpop.f32.mrb[7].mxu0  ;;  %v3011_v52 = vld [vmem:[%s5532_s5 + $0x110] sm:$0xff]  ;;  %v1404_v63 = vld [vmem:[%s5532_s5 + $0x18] sm:$0xff]  ;;  %v2001_v2 = vld [vmem:[%s5535_s8] sm:$0xff] }
 0x16f   : > { %v3943_v5 = vpop.eup %3942  ;;  %v1185_v6 = vadd.f32 %v1175_v53, %v1155_v4  ;;  %v3013_v53 = vld [vmem:[%s5532_s5 + $0x120] sm:$0xff]  ;;  %v3626_v1 = vpack.c.bf16 %v1404_v63, %v1402_v62  ;;  %v2003_v4 = vld [vmem:[%s5535_s8 + $0x10] sm:$0xff] }
 0x170   : > { %v3945_v8 = vpop.eup %3944  ;;  %2992 = vmatprep.mubr.msk.f32.mxu1 %vm1217_vm1, %v3943_v5  ;;  %v3620_v56 = vpack.c.bf16 %v3013_v53, %v3011_v52  ;;  %v1411_v52 = vld [vmem:[%s5532_s5 + $0x50] sm:$0xff]  ;;  %v1414_v53 = vld [vmem:[%s5532_s5 + $0x68] sm:$0xff]  ;;  %v1417_v63 = vld [vmem:[%s5532_s5 + $0x80] sm:$0xff] }
 0x171   : > { %3954 = vtanh.f32 %v1185_v6  ;;  %1295 = vmatmul.mubr.f32.vlgmr.msra.gmra.mrb[0].mxu1 %v3945_v8  ;;  %v2004_v6 = vld [vmem:[%s5535_s8 + $0x18] sm:$0xff] }
 0x172   : > { %3956 = vtanh.f32 %v1184_v3  ;;  %v2002_v3 = vld [vmem:[%s5535_s8 + $0x8] sm:$0xff]  ;;  %v3710_v8 = vpack.c.bf16 %v2004_v6, %v2003_v4  ;;  %v3032_v4 = vld [vmem:[%s5532_s5 + $0x178] sm:$0xff]  ;;  %v3031_v6 = vld [vmem:[%s5532_s5 + $0x170] sm:$0xff] }
 0x173   : > { %v3947_v9 = vpop.eup %3946  ;;  %v3707_v5 = vpack.c.bf16 %v2002_v3, %v2001_v2  ;;  %v1422_v2 = vld [vmem:[%s5532_s5 + $0xa8] sm:$0xf] }
 0x174   : > { %v3949_v10 = vpop.eup %3948  ;;  %2993 = vmatprep.mubr.msk.f32.mxu1 %vm1217_vm1, %v3947_v9  ;;  %v2005_v9 = vld [vmem:[%s5535_s8 + $0x20] sm:$0xff]  ;;  %v3030_v3 = vld [vmem:[%s5532_s5 + $0x168] sm:$0xff] }
 0x175   : > { %1300 = vmatmul.mubr.f32.gmra.mrb[2].mxu1 %v3949_v10  ;;  %3708 = vmatpush1.bf16.msra.mxu0 %v3707_v5  ;;  %v2006_v10 = vld [vmem:[%s5535_s8 + $0x28] sm:$0xff]  ;;  %v3029_v5 = vld [vmem:[%s5532_s5 + $0x160] sm:$0xff] }
 0x176   : > { %3709 = vmatprep.subr.bf16.mxu0 %v4039_v21 }
 0x177   : > { %v3951_v11 = vpop.eup %3950 }
 0x178   : > { %v3953_v12 = vpop.eup %3952  ;;  %2994 = vmatprep.mubr.msk.f32.mxu1 %vm1217_vm1, %v3951_v11  ;;  %v3713_v11 = vpack.c.bf16 %v2006_v10, %v2005_v9  ;;  %v3036_v9 = vld [vmem:[%s5532_s5 + $0x198] sm:$0xff]  ;;  %v1421_v10 = vld [vmem:[%s5532_s5 + $0xa0] sm:$0xf] }
 0x179   : > { %1305 = vmatmul.mubr.f32.gmra.mrb[4].mxu1 %v3953_v12  ;;  %3711 = vmatpush1.bf16.msra.mxu0 %v3710_v8  ;;  %v2007_v12 = vld [vmem:[%s5535_s8 + $0x30] sm:$0xff]  ;;  %v3034_v8 = vld [vmem:[%s5532_s5 + $0x188] sm:$0xff] }
 0x17a   : > { %3712 = vmatprep.subr.bf16.mxu0 %v4039_v21 }
 0x17b   : > { %v3955_v13 = vpop.eup %3954 }
 0x17c   : > { %v3957_v14 = vpop.eup %3956  ;;  %2995 = vmatprep.mubr.msk.f32.mxu1 %vm1217_vm1, %v3955_v13  ;;  %v2008_v13 = vld [vmem:[%s5535_s8 + $0x38] sm:$0xff]  ;;  %vm2786_vm1 = vcmask 73728  }
 0x17d   : > { %1310 = vmatmul.mubr.f32.gmra.mrb[6].mxu1 %v3957_v14  ;;  %3714 = vmatpush1.bf16.msra.mxu0 %v3713_v11  ;;  %v3716_v14 = vpack.c.bf16 %v2008_v13, %v2007_v12  ;;  %v3646_v11 = vpack.c.bf16 %v3032_v4, %v3030_v3  ;;  %v3648_v12 = vpack.c.bf16 %v3031_v6, %v3029_v5  ;;  %v3067_v4 = vld [vmem:[%s5532_s5 + $0x270] sm:$0xff]  ;;  %v3069_v5 = vld [vmem:[%s5532_s5 + $0x280] sm:$0xff]  ;;  %v3072_v6 = vld [vmem:[%s5532_s5 + $0x298] sm:$0xff] }
 0x17e   : > { %3263 = vmatprep.mubr.msk.f32.mxu1 %vm1315_vm2, %v1194_v15  ;;  %3715 = vmatprep.subr.bf16.mxu0 %v4039_v21  ;;  %v2009_v15 = vld [vmem:[%s5535_s8 + $0x40] sm:$0xff]  ;;  %v3650_v13 = vpack.c.bf16 %v3036_v9, %v3034_v8  ;;  %v3680_v8 = vpack.c.bf16 %v3069_v5, %v3067_v4 }
 0x181   : > { %3717 = vmatpush1.bf16.msra.mxu0 %v3716_v14  ;;  %v3033_v14 = vld [vmem:[%s5532_s5 + $0x180] sm:$0xff] }
 0x182   : > { %3718 = vmatprep.subr.bf16.mxu0 %v4039_v21 }
 0x244   : > { %v1296_v16 = vpop.f32.mrb[0].mxu1 }
 0x245   : > { %v1298_v17 = vpop.f32.mrb[1].mxu1 }
 0x248   : > { %v1301_v18 = vpop.f32.mrb[2].mxu1 }
 0x249   : > { %v3596_v19 = vpack.c.bf16 %v1301_v18, %v1296_v16  ;;  %v1303_v20 = vpop.f32.mrb[3].mxu1  ;;  %v2010_v16 = vld [vmem:[%s5535_s8 + $0x48] sm:$0xff]  ;;  %v2011_v18 = vld [vmem:[%s5535_s8 + $0x50] sm:$0xff] }
 0x24a   : > { %v3719_v17 = vpack.c.bf16 %v2010_v16, %v2009_v15  ;;  %v3035_v15 = vld [vmem:[%s5532_s5 + $0x190] sm:$0xff]  ;;  %v3038_v16 = vld [vmem:[%s5532_s5 + $0x1a8] sm:$0xff] }
 0x24b   : > { %3597 = vmatprep.subr.bf16.mxu1 %v3596_v19 }
 0x24c   : > { %v1306_v22 = vpop.f32.mrb[4].mxu1  ;;  %3599 = vmatpush3.bf16.msra.mxu1 %v3596_v19  ;;  %v2012_v19 = vld [vmem:[%s5535_s8 + $0x58] sm:$0xff]  ;;  %3720 = vmatpush1.bf16.msra.mxu0 %v3719_v17 }
 0x24d   : > { %v1308_v23 = vpop.f32.mrb[5].mxu1  ;;  %v3722_v20 = vpack.c.bf16 %v2012_v19, %v2011_v18  ;;  %3721 = vmatprep.subr.bf16.mxu0 %v4039_v21  ;;  %v3040_v17 = vld [vmem:[%s5532_s5 + $0x1b8] sm:$0xff]  ;;  %v3652_v18 = vpack.c.bf16 %v3035_v15, %v3033_v14  ;;  %v3082_v14 = vld [vmem:[%s5532_s5 + $0x2c8] sm:$0xff] }
 0x24e   : > { %v1403_v23 = vld [vmem:[%s5532_s5 + $0x10] sm:$0xff]  ;;  %v3654_v19 = vpack.c.bf16 %v3040_v17, %v3038_v16  ;;  %v3084_v15 = vld [vmem:[%s5532_s5 + $0x2d8] sm:$0xff]  ;;  %v3081_v16 = vld [vmem:[%s5532_s5 + $0x2c0] sm:$0xff] }
 0x24f   : > { %v3083_v17 = vld [vmem:[%s5532_s5 + $0x2d0] sm:$0xff] }
 0x250   : > { %v1311_v26 = vpop.f32.mrb[6].mxu1  ;;  %3723 = vmatpush1.bf16.msra.mxu0 %v3722_v20  ;;  %v3037_v20 = vld [vmem:[%s5532_s5 + $0x1a0] sm:$0xff] }
 0x251   : > { %v3600_v27 = vpack.c.bf16 %v1311_v26, %v1306_v22  ;;  %v1313_v28 = vpop.f32.mrb[7].mxu1  ;;  %3724 = vmatprep.subr.bf16.mxu0 %v4039_v21  ;;  %v1401_v22 = vld [vmem:[%s5532_s5] sm:$0xff]  ;;  %v1406_v26 = vld [vmem:[%s5532_s5 + $0x28] sm:$0xff] }
 0x252   : > { %v3628_v25 = vpack.c.bf16 %v1403_v23, %v1401_v22  ;;  %v3039_v22 = vld [vmem:[%s5532_s5 + $0x1b0] sm:$0xff]  ;;  %v3042_v23 = vld [vmem:[%s5532_s5 + $0x1c8] sm:$0xff] }
 0x253   : > { %3602 = vmatprep.subr.msk.bf16.mxu1 %vm3601_vm5, %v3600_v27 }
 0x254   : > { %3605 = vmatpush3.bf16.msk.msra.mxu1 %vm3601_vm5, %v3600_v27  ;;  %v1408_v27 = vld [vmem:[%s5532_s5 + $0x38] sm:$0xff] }
 0x255   : > { %3607 = vmatprep.subr.bf16.mxu1 %v3606_v29  ;;  %v3630_v37 = vpack.c.bf16 %v1408_v27, %v1406_v26  ;;  %v3656_v26 = vpack.c.bf16 %v3039_v22, %v3037_v20  ;;  %v3075_v20 = vld [vmem:[%s5532_s5 + $0x2b0] sm:$0xf]  ;;  %v3686_v22 = vpack.c.bf16 %v3084_v15, %v3082_v14  ;;  %v3113_v15 = vld [vmem:[%s5536_s9 + $0x60] sm:$0xff] }
 0x257   : > { %3264 = vmatmul.mubr.msk.f32.vlgmr.msra.gmra.mrb[8].mxu1 %vm1315_vm2, %v1195_v34 }
 0x258   : > { %3609 = vmatpush1.bf16.msra.mxu1 %v3608_v35  ;;  %1527 = vmatprep.mubr.f32.mxu1 %v4038_v7 }
 0x259   : > { %3611 = vmatprep.subr.bf16.mxu1 %v3610_v36 }
 0x25c   : > { %3613 = vmatpush1.bf16.msra.mxu1 %v3612_v41  ;;  %v1410_v41 = vld [vmem:[%s5532_s5 + $0x48] sm:$0xff] }
 0x25d   : > { %3615 = vmatprep.subr.bf16.mxu1 %v3614_v42  ;;  %v1412_v42 = vld [vmem:[%s5532_s5 + $0x58] sm:$0xff] }
 0x260   : > { %3617 = vmatpush1.bf16.msra.mxu1 %v3616_v47  ;;  %v3634_v47 = vpack.c.bf16 %v1412_v42, %v1410_v41  ;;  %v3056_v41 = vld [vmem:[%s5532_s5 + $0x218] sm:$0xff]  ;;  %v3058_v42 = vld [vmem:[%s5532_s5 + $0x228] sm:$0xff] }
 0x261   : > { %3619 = vmatprep.subr.bf16.mxu1 %v3618_v50  ;;  %v1409_v50 = vld [vmem:[%s5532_s5 + $0x40] sm:$0xff] }
 0x262   : > { %v3636_v55 = vpack.c.bf16 %v1411_v52, %v1409_v50  ;;  %v3060_v50 = vld [vmem:[%s5532_s5 + $0x238] sm:$0xff]  ;;  %v3062_v52 = vld [vmem:[%s5532_s5 + $0x248] sm:$0xff] }
 0x264   : > { %3621 = vmatpush1.bf16.msra.mxu1 %v3620_v56  ;;  %v3638_v56 = vpack.c.bf16 %v1416_v54, %v1414_v53  ;;  %v3049_v53 = vld [vmem:[%s5532_s5 + $0x200] sm:$0xf]  ;;  %v3666_v54 = vpack.c.bf16 %v3058_v42, %v3056_v41  ;;  %v3095_v41 = vld [vmem:[%s5532_s5 + $0x330] sm:$0xff]  ;;  %v3098_v42 = vld [vmem:[%s5532_s5 + $0x348] sm:$0xff] }
 0x265   : > { %3623 = vmatprep.subr.bf16.mxu1 %v3622_v57  ;;  %v1413_v57 = vld [vmem:[%s5532_s5 + $0x60] sm:$0xff] }
 0x268   : > { %3625 = vmatpush1.bf16.msra.mxu1 %v3624_v60  ;;  %v1420_v60 = vld [vmem:[%s5532_s5 + $0x98] sm:$0xff] }
 0x269   : > { %3021 = vmatprep.subr.msk.mxu1 %vm1322_vm3, %v3020_v61  ;;  %v3640_v61 = vpack.c.bf16 %v1415_v58, %v1413_v57  ;;  %v3642_v62 = vpack.c.bf16 %v1420_v60, %v1418_v59  ;;  %v3059_v57 = vld [vmem:[%s5532_s5 + $0x230] sm:$0xff]  ;;  %v3061_v58 = vld [vmem:[%s5532_s5 + $0x240] sm:$0xff]  ;;  %v3064_v59 = vld [vmem:[%s5532_s5 + $0x258] sm:$0xff] }
 0x26a   : > { %v3066_v60 = vld [vmem:[%s5532_s5 + $0x268] sm:$0xff] }
 0x26c   : > { %3022 = vmatpush1.msk.msra.mxu1 %vm1322_vm3, %v3019_v0  ;;  %v1419_v0 = vld [vmem:[%s5532_s5 + $0x90] sm:$0xff] }
 0x26d   : > { %3627 = vmatprep.subr.bf16.mxu1 %v3626_v1  ;;  %v3644_v1 = vpack.c.bf16 %v1419_v0, %v1417_v63  ;;  %v3063_v63 = vld [vmem:[%s5532_s5 + $0x250] sm:$0xff]  ;;  %v3065_v0 = vld [vmem:[%s5532_s5 + $0x260] sm:$0xff] }
 0x32a   : > { %v4821_v24 = vpop.f32.mrb[8].mxu1 }
 0x32b   : > { %v1450_v28 = vrot.slane %v4821_v24, 1  ;;  %v1652_v29 = vrot.slane %v4821_v24, 2  ;;  %v1770_v30 = vrot.slane %v4821_v24, 3  ;;  %v1887_v31 = vrot.slane %v4821_v24, 4  ;;  %v1392_v32 = vpop.f32.mrb[9].mxu1 }
 0x32c   : > { %v1449_v33 = vrot.slane %v1392_v32, 1  ;;  %v1651_v34 = vrot.slane %v1392_v32, 2  ;;  %v1769_v35 = vrot.slane %v1392_v32, 3  ;;  %v1886_v36 = vrot.slane %v1392_v32, 4 }
 0x32e   : > { %v1451_v40 = vsel %vm1448_vm6, %v1449_v33, %v1450_v28  ;;  %v4849_v43 = vsel %vm1650_vm8, %v1651_v34, %v1652_v29  ;;  %v4854_v44 = vsel %vm1768_vm9, %v1769_v35, %v1770_v30  ;;  %v4859_v45 = vsel %vm1322_vm3, %v1886_v36, %v1887_v31  ;;  %v3046_v33 = vld [vmem:[%s5532_s5 + $0x1e8] sm:$0xff]  ;;  %v3048_v34 = vld [vmem:[%s5532_s5 + $0x1f8] sm:$0xff] }
 0x32f   : > { %3023 = vmatmul.mubr.msk.f32.vlgmr.msra.gmra.mrb[10].mxu1 %vm1452_vm7, %v1451_v40  ;;  %v3662_v36 = vpack.c.bf16 %v3048_v34, %v3046_v33  ;;  %v3050_v40 = vld [vmem:[%s5532_s5 + $0x208] sm:$0xf] }
 0x330   : > { %3629 = vmatpush1.bf16.msra.mxu1 %v3628_v25  ;;  %1533 = vmatprep.mubr.f32.mxu1 %v4038_v7  ;;  %v3044_v25 = vld [vmem:[%s5532_s5 + $0x1d8] sm:$0xff] }
 0x331   : > { %3631 = vmatprep.subr.bf16.mxu1 %v3630_v37  ;;  %v3658_v27 = vpack.c.bf16 %v3044_v25, %v3042_v23  ;;  %v3045_v37 = vld [vmem:[%s5532_s5 + $0x1e0] sm:$0xff]  ;;  %v3688_v23 = vpack.c.bf16 %v3083_v17, %v3081_v16  ;;  %v3114_v16 = vld [vmem:[%s5536_s9 + $0x68] sm:$0xff] }
 0x332   : > { %v3664_v39 = vpack.c.bf16 %v3047_v38, %v3045_v37  ;;  %v3094_v37 = vld [vmem:[%s5532_s5 + $0x328] sm:$0xff]  ;;  %v3744_v17 = vpack.c.bf16 %v3114_v16, %v3113_v15  ;;  %v3131_v15 = vld [vmem:[%s5536_s9 + $0xe0] sm:$0xff] }
 0x333   : > { %3024 = vmatmul.mubr.msk.f32.gmra.mrb[12].mxu1 %vm1452_vm7, %v1450_v28  ;;  %v3041_v28 = vld [vmem:[%s5532_s5 + $0x1c0] sm:$0xff]  ;;  %v3132_v16 = vld [vmem:[%s5536_s9 + $0xe8] sm:$0xff] }
 0x334   : > { %3633 = vmatpush1.bf16.msra.mxu1 %v3632_v46  ;;  %1614 = vmatprep.mubr.f32.mxu1 %v4038_v7  ;;  %v3055_v46 = vld [vmem:[%s5532_s5 + $0x210] sm:$0xff] }
 0x335   : > { %3635 = vmatprep.subr.bf16.mxu1 %v3634_v47  ;;  %v3057_v47 = vld [vmem:[%s5532_s5 + $0x220] sm:$0xff] }
 0x338   : > { %3637 = vmatpush1.bf16.msra.mxu1 %v3636_v55  ;;  %v3668_v55 = vpack.c.bf16 %v3057_v47, %v3055_v46 }
 0x339   : > { %3639 = vmatprep.subr.bf16.mxu1 %v3638_v56  ;;  %v3670_v56 = vpack.c.bf16 %v3062_v52, %v3060_v50  ;;  %v3097_v50 = vld [vmem:[%s5532_s5 + $0x340] sm:$0xff]  ;;  %v3099_v52 = vld [vmem:[%s5532_s5 + $0x350] sm:$0xff] }
 0x33c   : > { %3641 = vmatpush1.bf16.msra.mxu1 %v3640_v61  ;;  %v3672_v61 = vpack.c.bf16 %v3061_v58, %v3059_v57  ;;  %v2014_v57 = vld [vmem:[%s5535_s8 + $0x68] sm:$0xff] }
 0x33d   : > { %3643 = vmatprep.subr.bf16.mxu1 %v3642_v62  ;;  %v3674_v62 = vpack.c.bf16 %v3066_v60, %v3064_v59  ;;  %v2017_v59 = vld [vmem:[%s5535_s8 + $0x80] sm:$0xff]  ;;  %v2018_v60 = vld [vmem:[%s5535_s8 + $0x88] sm:$0xff] }
 0x340   : > { %3645 = vmatpush1.bf16.msra.mxu1 %v3644_v1  ;;  %v3068_v1 = vld [vmem:[%s5532_s5 + $0x278] sm:$0xff] }
 0x341   : > { %3025 = vmatprep.subr.msk.mxu1 %vm1322_vm3, %v1422_v2  ;;  %v3676_v2 = vpack.c.bf16 %v3065_v0, %v3063_v63  ;;  %v2020_v63 = vld [vmem:[%s5535_s8 + $0x98] sm:$0xff] }
 0x344   : > { %3026 = vmatpush1.msk.msra.mxu1 %vm1322_vm3, %v1421_v10  ;;  %v3071_v10 = vld [vmem:[%s5532_s5 + $0x290] sm:$0xff] }
 0x345   : > { %3027 = vmatmul.mubr.msk.f32.vlgmr.msra.gmra.mrb[10].mxu1 %vm1452_vm7, %v1392_v32  ;;  %3647 = vmatprep.subr.bf16.mxu1 %v3646_v11  ;;  %v3043_v32 = vld [vmem:[%s5532_s5 + $0x1d0] sm:$0xff]  ;;  %v3073_v11 = vld [vmem:[%s5532_s5 + $0x2a0] sm:$0xff] }
 0x346   : > { %3649 = vmatpush1.bf16.msra.mxu1 %v3648_v12  ;;  %1620 = vmatprep.mubr.f32.mxu1 %v4038_v7  ;;  %v3660_v35 = vpack.c.bf16 %v3043_v32, %v3041_v28  ;;  %v3684_v12 = vpack.c.bf16 %v3073_v11, %v3071_v10  ;;  %v3090_v28 = vld [vmem:[%s5532_s5 + $0x308] sm:$0xff]  ;;  %v3092_v32 = vld [vmem:[%s5532_s5 + $0x318] sm:$0xff] }
 0x347   : > { %3651 = vmatprep.subr.bf16.mxu1 %v3650_v13  ;;  %v3076_v13 = vld [vmem:[%s5532_s5 + $0x2b8] sm:$0xf]  ;;  %v3694_v34 = vpack.c.bf16 %v3092_v32, %v3090_v28 }
 0x349   : > { %3028 = vmatmul.mubr.msk.f32.gmra.mrb[12].mxu1 %vm1452_vm7, %v4821_v24  ;;  %v2016_v24 = vld [vmem:[%s5535_s8 + $0x78] sm:$0xff] }
 0x34a   : > { %3653 = vmatpush1.bf16.msra.mxu1 %v3652_v18  ;;  %1728 = vmatprep.mubr.f32.mxu1 %v4038_v7  ;;  %v3086_v18 = vld [vmem:[%s5532_s5 + $0x2e8] sm:$0xff] }
 0x34b   : > { %3655 = vmatprep.subr.bf16.mxu1 %v3654_v19  ;;  %v3088_v19 = vld [vmem:[%s5532_s5 + $0x2f8] sm:$0xff] }
 0x34c   : > { %v3690_v25 = vpack.c.bf16 %v3088_v19, %v3086_v18  ;;  %v3115_v18 = vld [vmem:[%s5536_s9 + $0x70] sm:$0xff]  ;;  %v3116_v19 = vld [vmem:[%s5536_s9 + $0x78] sm:$0xff] }
 0x34e   : > { %3657 = vmatpush1.bf16.msra.mxu1 %v3656_v26  ;;  %v3085_v26 = vld [vmem:[%s5532_s5 + $0x2e0] sm:$0xff] }
 0x34f   : > { %3659 = vmatprep.subr.bf16.mxu1 %v3658_v27  ;;  %v3087_v27 = vld [vmem:[%s5532_s5 + $0x2f0] sm:$0xff] }
 0x350   : > { %v3692_v33 = vpack.c.bf16 %v3087_v27, %v3085_v26  ;;  %v3119_v26 = vld [vmem:[%s5536_s9 + $0x90] sm:$0xff]  ;;  %v3120_v27 = vld [vmem:[%s5536_s9 + $0x98] sm:$0xff] }
 0x351   : > { %v3753_v28 = vpack.c.bf16 %v3120_v27, %v3119_v26  ;;  %v3147_v26 = vld [vmem:[%s5536_s9 + $0x150] sm:$0xff]  ;;  %v3148_v27 = vld [vmem:[%s5536_s9 + $0x158] sm:$0xff] }
 0x352   : > { %3661 = vmatpush1.bf16.msra.mxu1 %v3660_v35  ;;  %v3089_v35 = vld [vmem:[%s5532_s5 + $0x300] sm:$0xff] }
 0x353   : > { %3663 = vmatprep.subr.bf16.mxu1 %v3662_v36  ;;  %v3091_v36 = vld [vmem:[%s5532_s5 + $0x310] sm:$0xff] }
 0x354   : > { %v3696_v38 = vpack.c.bf16 %v3091_v36, %v3089_v35  ;;  %v2181_v35 = vld [vmem:[%s5536_s9] sm:$0xff]  ;;  %v2182_v36 = vld [vmem:[%s5536_s9 + $0x8] sm:$0xff] }
 0x356   : > { %3665 = vmatpush1.bf16.msra.mxu1 %v3664_v39 }
 0x357   : > { %3051 = vmatprep.subr.msk.mxu1 %vm1322_vm3, %v3050_v40  ;;  %v3093_v40 = vld [vmem:[%s5532_s5 + $0x320] sm:$0xff] }
 0x358   : > { %v3700_v46 = vpack.c.bf16 %v3095_v41, %v3093_v40  ;;  %v2183_v40 = vld [vmem:[%s5536_s9 + $0x10] sm:$0xff]  ;;  %v2184_v41 = vld [vmem:[%s5536_s9 + $0x18] sm:$0xff] }
 0x35a   : > { %3052 = vmatpush1.msk.msra.mxu1 %vm1322_vm3, %v3049_v53  ;;  %v3704_v53 = vpack.c.bf16 %v3099_v52, %v3097_v50  ;;  %v2187_v50 = vld [vmem:[%s5536_s9 + $0x30] sm:$0xff]  ;;  %v2188_v52 = vld [vmem:[%s5536_s9 + $0x38] sm:$0xff] }
 0x35b   : > { %3053 = vmatmul.mubr.msk.f32.vlgmr.msra.gmra.mrb[10].mxu1 %vm1452_vm7, %v4849_v43  ;;  %3667 = vmatprep.subr.bf16.mxu1 %v3666_v54  ;;  %v3070_v43 = vld [vmem:[%s5532_s5 + $0x288] sm:$0xff] }
 0x35c   : > { %3669 = vmatpush1.bf16.msra.mxu1 %v3668_v55  ;;  %1734 = vmatprep.mubr.f32.mxu1 %v4038_v7  ;;  %v3678_v3 = vpack.c.bf16 %v3070_v43, %v3068_v1  ;;  %v3102_v54 = vld [vmem:[%s5532_s5 + $0x368] sm:$0xf]  ;;  %v3101_v55 = vld [vmem:[%s5532_s5 + $0x360] sm:$0xf] }
 0x35d   : > { %3671 = vmatprep.subr.bf16.mxu1 %v3670_v56  ;;  %v2013_v56 = vld [vmem:[%s5535_s8 + $0x60] sm:$0xff] }
 0x35e   : > { %v3725_v58 = vpack.c.bf16 %v2014_v57, %v2013_v56  ;;  %v1980_v1 = vld [vmem:[%s5533_s6] sm:$0x3]  ;;  %v3134_v57 = vld [vmem:[%s5536_s9 + $0xf0] sm:$0xff] }
 0x35f   : > { %3054 = vmatmul.mubr.msk.f32.gmra.mrb[12].mxu1 %vm1452_vm7, %v1652_v29  ;;  %v3074_v29 = vld [vmem:[%s5532_s5 + $0x2a8] sm:$0xff]  ;;  %v1985_v43 = vrot.slane %v1980_v1, %v1170_v49 }
 0x360   : > { %3673 = vmatpush1.bf16.msra.mxu1 %v3672_v61  ;;  %1846 = vmatprep.mubr.f32.mxu1 %v4038_v7  ;;  %v3682_v9 = vpack.c.bf16 %v3074_v29, %v3072_v6  ;;  %v3731_v61 = vpack.c.bf16 %v2018_v60, %v2017_v59  ;;  %v3136_v59 = vld [vmem:[%s5536_s9 + $0x100] sm:$0xff]  ;;  %v3137_v60 = vld [vmem:[%s5536_s9 + $0x108] sm:$0xff] }
 0x361   : > { %3675 = vmatprep.subr.bf16.mxu1 %v3674_v62  ;;  %3726 = vmatpush1.bf16.msra.mxu0 %v3725_v58  ;;  %v2019_v62 = vld [vmem:[%s5535_s8 + $0x90] sm:$0xff]  ;;  %v3135_v58 = vld [vmem:[%s5536_s9 + $0xf8] sm:$0xff] }
 0x362   : > { %3727 = vmatprep.subr.bf16.mxu0 %v4039_v21  ;;  %v3734_v0 = vpack.c.bf16 %v2020_v63, %v2019_v62 }
 0x364   : > { %3677 = vmatpush1.bf16.msra.mxu1 %v3676_v2  ;;  %v1989_v2 = vrot.slane %v1980_v1, %v1174_v51  ;;  %v3111_v51 = vld [vmem:[%s5536_s9 + $0x50] sm:$0xff] }
 0x365   : > { %3679 = vmatprep.subr.bf16.mxu1 %v3678_v3  ;;  %v3125_v1 = vld [vmem:[%s5536_s9 + $0xb0] sm:$0xff] }
 0x368   : > { %3681 = vmatpush1.bf16.msra.mxu1 %v3680_v8 }
 0x369   : > { %3683 = vmatprep.subr.bf16.mxu1 %v3682_v9 }
 0x36c   : > { %3685 = vmatpush1.bf16.msra.mxu1 %v3684_v12 }
 0x36d   : > { %3077 = vmatprep.subr.msk.mxu1 %vm1322_vm3, %v3076_v13  ;;  %v3112_v13 = vld [vmem:[%s5536_s9 + $0x58] sm:$0xff] }
 0x36e   : > { %v3741_v14 = vpack.c.bf16 %v3112_v13, %v3111_v51  ;;  %v3142_v51 = vld [vmem:[%s5536_s9 + $0x130] sm:$0xff]  ;;  %v3143_v13 = vld [vmem:[%s5536_s9 + $0x138] sm:$0xff] }
 0x370   : > { %3078 = vmatpush1.msk.msra.mxu1 %vm1322_vm3, %v3075_v20  ;;  %v3747_v20 = vpack.c.bf16 %v3116_v19, %v3115_v18  ;;  %v3783_v18 = vpack.c.bf16 %v3132_v16, %v3131_v15  ;;  %v3145_v19 = vld [vmem:[%s5536_s9 + $0x140] sm:$0xff] }
 0x371   : > { %3079 = vmatmul.mubr.msk.f32.vlgmr.msra.gmra.mrb[10].mxu1 %vm1452_vm7, %v4854_v44  ;;  %3687 = vmatprep.subr.bf16.mxu1 %v3686_v22  ;;  %v3096_v44 = vld [vmem:[%s5532_s5 + $0x338] sm:$0xff]  ;;  %v3117_v22 = vld [vmem:[%s5536_s9 + $0x80] sm:$0xff] }
 0x372   : > { %3689 = vmatpush1.bf16.msra.mxu1 %v3688_v23  ;;  %1852 = vmatprep.mubr.f32.mxu1 %v4038_v7  ;;  %v3698_v39 = vpack.c.bf16 %v3096_v44, %v3094_v37  ;;  %v3118_v23 = vld [vmem:[%s5536_s9 + $0x88] sm:$0xff]  ;;  %v2604_v15 = vld [vmem:[%s5537_s10] sm:$0x1] }
 0x373   : > { %3691 = vmatprep.subr.bf16.mxu1 %v3690_v25  ;;  %v3750_v25 = vpack.c.bf16 %v3118_v23, %v3117_v22 }
 0x375   : > { %3080 = vmatmul.mubr.msk.f32.gmra.mrb[12].mxu1 %vm1452_vm7, %v1770_v30  ;;  %v3100_v30 = vld [vmem:[%s5532_s5 + $0x358] sm:$0xff] }
 0x376   : > { %3693 = vmatpush1.bf16.msra.mxu1 %v3692_v33  ;;  %1963 = vmatprep.mubr.f32.mxu1 %v4038_v7  ;;  %v3702_v47 = vpack.c.bf16 %v3100_v30, %v3098_v42  ;;  %v3759_v42 = vpack.c.bf16 %v2184_v41, %v2183_v40  ;;  %v2185_v30 = vld [vmem:[%s5536_s9 + $0x20] sm:$0xff] }
 0x377   : > { %3695 = vmatprep.subr.bf16.mxu1 %v3694_v34  ;;  %v2607_v41 = vld [vmem:[%s5538_s11] sm:$0xff] }
 0x37a   : > { %3697 = vmatpush1.bf16.msra.mxu1 %v3696_v38  ;;  %v2000_v38 = vld [vmem:[%s5534_s7] sm:$0x1f] }
 0x37b   : > { %3699 = vmatprep.subr.bf16.mxu1 %v3698_v39  ;;  %v3756_v39 = vpack.c.bf16 %v2182_v36, %v2181_v35  ;;  %v3151_v35 = vld [vmem:[%s5536_s9 + $0x170] sm:$0xff]  ;;  %v3152_v36 = vld [vmem:[%s5536_s9 + $0x178] sm:$0xff] }
 0x37e   : > { %3701 = vmatpush1.bf16.msra.mxu1 %v3700_v46  ;;  %v2186_v46 = vld [vmem:[%s5536_s9 + $0x28] sm:$0xff] }
 0x37f   : > { %3703 = vmatprep.subr.bf16.mxu1 %v3702_v47  ;;  %v3762_v47 = vpack.c.bf16 %v2186_v46, %v2185_v30  ;;  %v2609_v30 = vld [vmem:[%s5538_s11 + $0x10] sm:$0xff] }
 0x382   : > { %3705 = vmatpush1.bf16.msra.mxu1 %v3704_v53  ;;  %v3765_v53 = vpack.c.bf16 %v2188_v52, %v2187_v50  ;;  %v2611_v52 = vld [vmem:[%s5538_s11 + $0x20] sm:$0xff] }
 0x383   : > { %3103 = vmatprep.subr.msk.mxu1 %vm1322_vm3, %v3102_v54  ;;  %v2189_v54 = vld [vmem:[%s5536_s9 + $0x40] sm:$0xff] }
 0x386   : > { %3104 = vmatpush1.msk.msra.mxu1 %vm1322_vm3, %v3101_v55  ;;  %v2190_v55 = vld [vmem:[%s5536_s9 + $0x48] sm:$0xff] }
 0x387   : > { %3105 = vmatmul.mubr.msk.f32.vlgmr.msra.gmra.mrb[10].mxu1 %vm1452_vm7, %v4859_v45  ;;  %3736 = vmatprep.subr.bf16.mxu1 %v4039_v21  ;;  %v2015_v45 = vld [vmem:[%s5535_s8 + $0x70] sm:$0xff]  ;;  %v3768_v56 = vpack.c.bf16 %v2190_v55, %v2189_v54 }
 0x388   : > { %1969 = vmatprep.mubr.f32.mxu1 %v4038_v7  ;;  %v2613_v55 = vld [vmem:[%s5538_s11 + $0x30] sm:$0xff] }
 0x38b   : > { %3106 = vmatmul.mubr.msk.f32.gmra.mrb[12].mxu1 %vm1452_vm7, %v1887_v31  ;;  %v3728_v31 = vpack.c.bf16 %v2016_v24, %v2015_v45  ;;  %v3123_v45 = vld [vmem:[%s5536_s9 + $0xa0] sm:$0xff]  ;;  %v3124_v24 = vld [vmem:[%s5536_s9 + $0xa8] sm:$0xff] }
 0x38c   : > { %3270 = vmatprep.mubr.msk.f32.mxu1 %vm4041_vm11, %v4038_v7  ;;  %v3771_v62 = vpack.c.bf16 %v3124_v24, %v3123_v45  ;;  %v2616_v45 = vld [vmem:[%s5538_s11 + $0x48] sm:$0xff] }
 0x38d   : > { %3729 = vmatpush1.bf16.msra.mxu0 %v3728_v31  ;;  %v3786_v31 = vpack.c.bf16 %v3135_v58, %v3134_v57  ;;  %v2615_v58 = vld [vmem:[%s5538_s11 + $0x40] sm:$0xff] }
 0x38e   : > { %3730 = vmatprep.subr.bf16.mxu0 %v4039_v21  ;;  %v3828_v24 = vpack.c.bf16 %v2616_v45, %v2615_v58 }
 0x391   : > { %3732 = vmatpush1.bf16.msra.mxu0 %v3731_v61 }
 0x392   : > { %3733 = vmatprep.subr.bf16.mxu0 %v4039_v21 }
 0x395   : > { %3735 = vmatpush1.bf16.msra.mxu0 %v3734_v0 }
 0x396   : > { %3740 = vmatprep.subr.bf16.mxu0 %v4039_v21 }
 0x45a   : > { %v1965_v3 = vpop.f32.mrb[10].mxu1 }
 0x45b   : > { %v1992_v4 = vadd.f32 %v1985_v43, %v1965_v3  ;;  %v1967_v5 = vpop.f32.mrb[11].mxu1  ;;  %v3138_v3 = vld [vmem:[%s5536_s9 + $0x110] sm:$0xff] }
 0x45c   : > { %v1993_v6 = vadd.f32 %v1989_v2, %v1967_v5 }
 0x45e   : > { %3958 = vtanh.f32 %v1993_v6  ;;  %v1971_v29 = vpop.f32.mrb[12].mxu1  ;;  %v3127_v6 = vld [vmem:[%s5536_s9 + $0xc0] sm:$0xff] }
 0x45f   : > { %3960 = vtanh.f32 %v1992_v4  ;;  %v1994_v8 = vadd.f32 %v1985_v43, %v1971_v29  ;;  %v1973_v9 = vpop.f32.mrb[13].mxu1  ;;  %v3126_v43 = vld [vmem:[%s5536_s9 + $0xb8] sm:$0xff]  ;;  %v3128_v29 = vld [vmem:[%s5536_s9 + $0xc8] sm:$0xff] }
 0x460   : > { %v1995_v10 = vadd.f32 %v1989_v2, %v1973_v9  ;;  %v3789_v2 = vpack.c.bf16 %v3137_v60, %v3136_v59  ;;  %v3139_v4 = vld [vmem:[%s5536_s9 + $0x118] sm:$0xff]  ;;  %v3774_v5 = vpack.c.bf16 %v3126_v43, %v3125_v1  ;;  %v3140_v9 = vld [vmem:[%s5536_s9 + $0x120] sm:$0xff]  ;;  %v2699_v43 = vld [vmem:[%s5540_s13 + $0x8] sm:$0xff] }
 0x461   : > { %v2618_v59 = vld [vmem:[%s5538_s11 + $0x58] sm:$0xff]  ;;  %v2698_v1 = vld [vmem:[%s5540_s13] sm:$0xff] }
 0x462   : > { %3962 = vtanh.f32 %v1995_v10  ;;  %v3141_v10 = vld [vmem:[%s5536_s9 + $0x128] sm:$0xff] }
 0x463   : > { %3964 = vtanh.f32 %v1994_v8  ;;  %v3792_v8 = vpack.c.bf16 %v3139_v4, %v3138_v3  ;;  %v3837_v3 = vpack.c.bf16 %v2699_v43, %v2698_v1  ;;  %v2701_v4 = vld [vmem:[%s5540_s13 + $0x18] sm:$0xff] }
 0x468   : > { %v3959_v11 = vpop.eup %3958 }
 0x469   : > { %v3961_v12 = vpop.eup %3960  ;;  %3107 = vmatprep.mubr.msk.f32.mxu0 %vm2021_vm10, %v3959_v11  ;;  %v3777_v11 = vpack.c.bf16 %v3128_v29, %v3127_v6 }
 0x46a   : > { %2093 = vmatmul.mubr.f32.vlgmr.msra.gmra.mrb[8].mxu0 %v3961_v12  ;;  %v3129_v12 = vld [vmem:[%s5536_s9 + $0xd0] sm:$0xff] }
 0x46b   : > { %3742 = vmatpush3.bf16.msra.mxu0 %v3741_v14 }
 0x46c   : > { %v3963_v49 = vpop.eup %3962  ;;  %3743 = vmatprep.subr.bf16.mxu0 %v4039_v21 }
 0x46d   : > { %v3965_v48 = vpop.eup %3964  ;;  %3108 = vmatprep.mubr.msk.f32.mxu0 %vm2021_vm10, %v3963_v49  ;;  %v3130_v49 = vld [vmem:[%s5536_s9 + $0xd8] sm:$0xff] }
 0x46e   : > { %2098 = vmatmul.mubr.f32.gmra.mrb[10].mxu0 %v3965_v48  ;;  %v3795_v48 = vpack.c.bf16 %v3141_v10, %v3140_v9  ;;  %v3780_v14 = vpack.c.bf16 %v3130_v49, %v3129_v12 }
 0x46f   : > { %3293 = vmatprep.mubr.msk.f32.mxu0 %vm4041_vm11, %v4038_v7  ;;  %3745 = vmatpush3.bf16.msra.mxu0 %v3744_v17  ;;  %v3798_v17 = vpack.c.bf16 %v3143_v13, %v3142_v51 }
 0x470   : > { %3746 = vmatprep.subr.bf16.mxu0 %v4039_v21 }
 0x473   : > { %3748 = vmatpush3.bf16.msra.mxu0 %v3747_v20  ;;  %v3146_v20 = vld [vmem:[%s5536_s9 + $0x148] sm:$0xff] }
 0x474   : > { %3749 = vmatprep.subr.bf16.mxu0 %v4039_v21  ;;  %v3801_v23 = vpack.c.bf16 %v3146_v20, %v3145_v19  ;;  %v2702_v20 = vld [vmem:[%s5540_s13 + $0x20] sm:$0xff] }
 0x477   : > { %3751 = vmatpush3.bf16.msra.mxu0 %v3750_v25 }
 0x478   : > { %3752 = vmatprep.subr.bf16.mxu0 %v4039_v21 }
 0x47b   : > { %3754 = vmatpush3.bf16.msra.mxu0 %v3753_v28  ;;  %v3804_v28 = vpack.c.bf16 %v3148_v27, %v3147_v26  ;;  %v2705_v26 = vld [vmem:[%s5540_s13 + $0x38] sm:$0xff] }
 0x47c   : > { %3770 = vmatprep.subr.bf16.mxu0 %v4039_v21 }
 0x53d   : > { %v2094_v32 = vpop.f32.mrb[8].mxu0 }
 0x53e   : > { %v2096_v33 = vpop.f32.mrb[9].mxu0 }
 0x53f   : > { %v3150_v33 = vld [vmem:[%s5536_s9 + $0x168] sm:$0xff] }
 0x541   : > { %v2099_v34 = vpop.f32.mrb[10].mxu0 }
 0x542   : > { %v3737_v37 = vpack.c.bf16 %v2099_v34, %v2094_v32  ;;  %v2101_v44 = vpop.f32.mrb[11].mxu0  ;;  %v3149_v32 = vld [vmem:[%s5536_s9 + $0x160] sm:$0xff] }
 0x543   : > { %v3807_v34 = vpack.c.bf16 %v3150_v33, %v3149_v32  ;;  %v3153_v44 = vld [vmem:[%s5536_s9 + $0x180] sm:$0xff]  ;;  %v2707_v32 = vld [vmem:[%s5540_s13 + $0x48] sm:$0xff] }
 0x544   : > { %3739 = vmatpush3.bf16.msk.msra.mxu1 %vm3738_vm13, %v3737_v37  ;;  %v3810_v37 = vpack.c.bf16 %v3152_v36, %v3151_v35  ;;  %v2622_v35 = vld [vmem:[%s5539_s12] sm:$0x1] }
 0x545   : > { %3755 = vmatprep.subr.bf16.mxu1 %v4039_v21 }
 0x547   : > { %3271 = vmatmul.mubr.msk.f32.vlgmr.msra.gmra.mrb[14].mxu1 %vm2103_vm14, %v2000_v38  ;;  %v3154_v38 = vld [vmem:[%s5536_s9 + $0x188] sm:$0xff] }
 0x548   : > { %3757 = vmatpush3.bf16.msra.mxu1 %v3756_v39  ;;  %3316 = vmatprep.mubr.msk.f32.mxu1 %vm4041_vm11, %v4038_v7  ;;  %v3813_v39 = vpack.c.bf16 %v3154_v38, %v3153_v44 }
 0x549   : > { %3758 = vmatprep.subr.bf16.mxu1 %v4039_v21 }
 0x54c   : > { %3760 = vmatpush3.bf16.msra.mxu1 %v3759_v42  ;;  %v2608_v42 = vld [vmem:[%s5538_s11 + $0x8] sm:$0xff] }
 0x54d   : > { %3761 = vmatprep.subr.bf16.mxu1 %v4039_v21  ;;  %v3816_v46 = vpack.c.bf16 %v2608_v42, %v2607_v41 }
 0x550   : > { %3763 = vmatpush3.bf16.msra.mxu1 %v3762_v47  ;;  %v2610_v47 = vld [vmem:[%s5538_s11 + $0x18] sm:$0xff] }
 0x551   : > { %3764 = vmatprep.subr.bf16.mxu1 %v4039_v21  ;;  %v3819_v50 = vpack.c.bf16 %v2610_v47, %v2609_v30 }
 0x554   : > { %3766 = vmatpush3.bf16.msra.mxu1 %v3765_v53  ;;  %v2612_v53 = vld [vmem:[%s5538_s11 + $0x28] sm:$0xff] }
 0x555   : > { %3767 = vmatprep.subr.bf16.mxu1 %v4039_v21  ;;  %v3822_v54 = vpack.c.bf16 %v2612_v53, %v2611_v52 }
 0x558   : > { %3769 = vmatpush3.bf16.msra.mxu1 %v3768_v56  ;;  %v2614_v56 = vld [vmem:[%s5538_s11 + $0x38] sm:$0xff] }
 0x559   : > { %3785 = vmatprep.subr.bf16.mxu1 %v4039_v21  ;;  %v3825_v57 = vpack.c.bf16 %v2614_v56, %v2613_v55 }
 0x61a   : > { %v5267_v61 = vpop.f32.mrb[14].mxu1 }
 0x61b   : > { %v2203_v63 = vrot.slane %v5267_v61, 1  ;;  %3317 = vmatmul.mubr.msk.f32.vlgmr.msra.gmra.mrb[16].mxu1 %vm2204_vm15, %v5267_v61  ;;  %v3272_v0 = vpop.f32.mrb[15].mxu1  ;;  %v2445_v22 = vrot.slane %v5267_v61, 3  ;;  %v2360_v25 = vrot.slane %v5267_v61, 2  ;;  %v2530_v40 = vrot.slane %v5267_v61, 4  ;;  %v2619_v61 = vld [vmem:[%s5538_s11 + $0x60] sm:$0xff] }
 0x61c   : > { %3787 = vmatpush3.bf16.msra.mxu1 %v3786_v31  ;;  %3362 = vmatprep.mubr.msk.f32.mxu1 %vm4041_vm11, %v4038_v7  ;;  %v2617_v31 = vld [vmem:[%s5538_s11 + $0x50] sm:$0xff] }
 0x61d   : > { %3294 = vmatmul.mubr.msk.f32.vlgmr.msra.gmra.mrb[12].mxu0 %vm2204_vm15, %v2203_v63  ;;  %3788 = vmatprep.subr.bf16.mxu1 %v4039_v21  ;;  %v3831_v60 = vpack.c.bf16 %v2618_v59, %v2617_v31  ;;  %v2621_v0 = vld [vmem:[%s5538_s11 + $0x70] sm:$0xff] }
 0x61e   : > { %3772 = vmatpush3.bf16.msra.mxu0 %v3771_v62  ;;  %3339 = vmatprep.mubr.msk.f32.mxu0 %vm4041_vm11, %v4038_v7  ;;  %v2620_v62 = vld [vmem:[%s5538_s11 + $0x68] sm:$0xff] }
 0x61f   : > { %3773 = vmatprep.subr.bf16.mxu0 %v4039_v21  ;;  %v3834_v63 = vpack.c.bf16 %v2620_v62, %v2619_v61 }
 0x620   : > { %3790 = vmatpush3.bf16.msra.mxu1 %v3789_v2  ;;  %v2700_v2 = vld [vmem:[%s5540_s13 + $0x10] sm:$0xff] }
 0x621   : > { %3791 = vmatprep.subr.bf16.mxu1 %v4039_v21 }
 0x622   : > { %3775 = vmatpush3.bf16.msra.mxu0 %v3774_v5  ;;  %v3840_v5 = vpack.c.bf16 %v2701_v4, %v2700_v2 }
 0x623   : > { %3776 = vmatprep.subr.bf16.mxu0 %v4039_v21 }
 0x624   : > { %3793 = vmatpush3.bf16.msra.mxu1 %v3792_v8 }
 0x625   : > { %3794 = vmatprep.subr.bf16.mxu1 %v4039_v21 }
 0x626   : > { %3778 = vmatpush3.bf16.msra.mxu0 %v3777_v11 }
 0x627   : > { %3779 = vmatprep.subr.bf16.mxu0 %v4039_v21 }
 0x628   : > { %3796 = vmatpush3.bf16.msra.mxu1 %v3795_v48 }
 0x629   : > { %3797 = vmatprep.subr.bf16.mxu1 %v4039_v21 }
 0x62a   : > { %3781 = vmatpush3.bf16.msra.mxu0 %v3780_v14 }
 0x62b   : > { %3782 = vmatprep.subr.bf16.mxu0 %v4039_v21 }
 0x62c   : > { %3799 = vmatpush3.bf16.msra.mxu1 %v3798_v17 }
 0x62d   : > { %3815 = vmatprep.subr.bf16.mxu1 %v4039_v21 }
 0x62e   : > { %3784 = vmatpush3.bf16.msra.mxu0 %v3783_v18 }
 0x62f   : > { %3363 = vmatmul.mubr.msk.f32.vlgmr.msra.gmra.mrb[18].mxu1 %vm2204_vm15, %v2445_v22  ;;  %3800 = vmatprep.subr.bf16.mxu0 %v4039_v21  ;;  %v2703_v22 = vld [vmem:[%s5540_s13 + $0x28] sm:$0xff] }
 0x630   : > { %3418 = vmatprep.mubr.msk.f32.mxu1 %vm4041_vm11, %v4038_v7  ;;  %3817 = vmatpush3.bf16.msra.mxu1 %v3816_v46 }
 0x631   : > { %3340 = vmatmul.mubr.msk.f32.vlgmr.msra.gmra.mrb[14].mxu0 %vm2204_vm15, %v2360_v25  ;;  %3818 = vmatprep.subr.bf16.mxu1 %v4039_v21  ;;  %v2704_v25 = vld [vmem:[%s5540_s13 + $0x30] sm:$0xff] }
 0x632   : > { %3802 = vmatpush3.bf16.msra.mxu0 %v3801_v23  ;;  %3385 = vmatprep.mubr.msk.f32.mxu0 %vm4041_vm11, %v4038_v7  ;;  %v3843_v23 = vpack.c.bf16 %v2703_v22, %v2702_v20  ;;  %v3846_v27 = vpack.c.bf16 %v2705_v26, %v2704_v25 }
 0x633   : > { %3803 = vmatprep.subr.bf16.mxu0 %v4039_v21 }
 0x634   : > { %3820 = vmatpush3.bf16.msra.mxu1 %v3819_v50 }
 0x635   : > { %3821 = vmatprep.subr.bf16.mxu1 %v4039_v21 }
 0x636   : > { %3805 = vmatpush3.bf16.msra.mxu0 %v3804_v28  ;;  %v2706_v28 = vld [vmem:[%s5540_s13 + $0x40] sm:$0xff] }
 0x637   : > { %3806 = vmatprep.subr.bf16.mxu0 %v4039_v21  ;;  %v3849_v33 = vpack.c.bf16 %v2707_v32, %v2706_v28 }
 0x638   : > { %3823 = vmatpush3.bf16.msra.mxu1 %v3822_v54 }
 0x639   : > { %3824 = vmatprep.subr.bf16.mxu1 %v4039_v21 }
 0x63a   : > { %3808 = vmatpush3.bf16.msra.mxu0 %v3807_v34  ;;  %v2708_v34 = vld [vmem:[%s5540_s13 + $0x50] sm:$0xf] }
 0x63b   : > { %3809 = vmatprep.subr.bf16.mxu0 %v4039_v21 }
 0x63c   : > { %3826 = vmatpush3.bf16.msra.mxu1 %v3825_v57 }
 0x63d   : > { %3827 = vmatprep.subr.bf16.mxu1 %v4039_v21 }
 0x63e   : > { %3811 = vmatpush3.bf16.msra.mxu0 %v3810_v37 }
 0x63f   : > { %3812 = vmatprep.subr.bf16.mxu0 %v4039_v21 }
 0x640   : > { %3829 = vmatpush3.bf16.msra.mxu1 %v3828_v24 }
 0x641   : > { %3830 = vmatprep.subr.bf16.mxu1 %v4039_v21 }
 0x642   : > { %3814 = vmatpush3.bf16.msra.mxu0 %v3813_v39 }
 0x643   : > { %3836 = vmatprep.subr.bf16.mxu0 %v4039_v21 }
 0x644   : > { %3832 = vmatpush3.bf16.msra.mxu1 %v3831_v60 }
 0x645   : > { %3386 = vmatmul.mubr.msk.f32.vlgmr.msra.gmra.mrb[16].mxu0 %vm2204_vm15, %v2530_v40  ;;  %3833 = vmatprep.subr.bf16.mxu1 %v4039_v21 }
 0x646   : > { %3443 = vmatprep.mubr.msk.f32.mxu0 %vm4041_vm11, %v4038_v7  ;;  %3838 = vmatpush3.bf16.msra.mxu0 %v3837_v3 }
 0x647   : > { %3839 = vmatprep.subr.bf16.mxu0 %v4039_v21 }
 0x648   : > { %3835 = vmatpush3.bf16.msra.mxu1 %v3834_v63 }
 0x649   : > { %3416 = vmatprep.subr.mxu1 %v4038_v7 }
 0x64a   : > { %3841 = vmatpush3.bf16.msra.mxu0 %v3840_v5 }
 0x64b   : > { %3842 = vmatprep.subr.bf16.mxu0 %v4039_v21 }
 0x64c   : > { %3417 = vmatpush3.msra.mxu1 %v2621_v0 }
 0x64e   : > { %3844 = vmatpush3.bf16.msra.mxu0 %v3843_v23 }
 0x64f   : > { %3845 = vmatprep.subr.bf16.mxu0 %v4039_v21 }
 0x652   : > { %3847 = vmatpush3.bf16.msra.mxu0 %v3846_v27 }
 0x653   : > { %3848 = vmatprep.subr.bf16.mxu0 %v4039_v21 }
 0x656   : > { %3850 = vmatpush3.bf16.msra.mxu0 %v3849_v33 }
 0x657   : > { %3441 = vmatprep.subr.mxu0 %v4038_v7  ;;  %v2709_v7 = vld [vmem:[%s5541_s14] sm:$0x1] }
 0x65a   : > { %3442 = vmatpush3.msk.msra.mxu0 %vm1322_vm3, %v2708_v34 }
 0x6ee   : > { %v2345_v6 = vpop.f32.mrb[16].mxu1 }
 0x6ef   : > { %v3318_v29 = vpop.f32.mrb[17].mxu1 }
 0x6f0   : > { %v2273_v8 = vpop.f32.mrb[12].mxu0 }
 0x6f1   : > { %v2346_v9 = vadd.f32 %v2345_v6, %v2273_v8  ;;  %v3295_v10 = vpop.f32.mrb[13].mxu0 }
 0x702   : > { %v2514_v11 = vpop.f32.mrb[18].mxu1 }
 0x703   : > { %v3364_v12 = vpop.f32.mrb[19].mxu1 }
 0x704   : > { %v2429_v49 = vpop.f32.mrb[14].mxu0 }
 0x705   : > { %v2433_v48 = vadd.f32 %v2429_v49, %v2346_v9  ;;  %v3341_v51 = vpop.f32.mrb[15].mxu0 }
 0x707   : > { %v2518_v13 = vadd.f32 %v2514_v11, %v2433_v48 }
 0x718   : > { %v2599_v14 = vpop.f32.mrb[16].mxu0 }
 0x719   : > { %v2603_v16 = vadd.f32 %v2599_v14, %v2518_v13  ;;  %v3387_v17 = vpop.f32.mrb[17].mxu0 }
 0x71b   : > { %v2605_v18 = vadd.f32 %v2604_v15, %v2603_v16 }
 0x71d   : > { %3966 = vtanh.f32 %v2605_v18 }
 0x727   : > { %v3967_v19 = vpop.eup %3966 }
 0x728   : > { %3419 = vmatmul.mubr.msk.f32.vlgmr.msra.gmra.mrb[20].mxu1 %vm2623_vm0, %v3967_v19 }
 0x7fb   : > { %v2693_v36 = vpop.f32.mrb[20].mxu1 }
 0x7fc   : > { %v2694_v37 = vadd.f32 %v2693_v36, %v2622_v35  ;;  %v3420_v44 = vpop.f32.mrb[21].mxu1 }
 0x7fe   : > { %3968 = vtanh.f32 %v2694_v37 }
 0x808   : > { %v3969_v38 = vpop.eup %3968 }
 0x809   : > { %3444 = vmatmul.mubr.msk.f32.vlgmr.msra.gmra.mrb[18].mxu0 %vm1452_vm7, %v3969_v38 }
 0x8dc   : > { %v2782_v21 = vpop.f32.mrb[18].mxu0 }
 0x8dd   : > { %v2783_v39 = vadd.f32 %v2782_v21, %v2709_v7  ;;  %v3445_v40 = vpop.f32.mrb[19].mxu0 }
 0x8df   : > { %v2787_v41 = vsel %vm2786_vm1, %v2783_v39, -inf }
 0x8e0   : > { %2788 = vmax.xlane.f32.xlu0 %v2787_v41 }
 0x96d   : > { %v2789_v42 = vpop.xlane.xlu0 %2788 }
 0x96e   : > { %v2790_v30 = vsub.f32 %v2783_v39, %v2789_v42 }
 0x970   : > { %v2791_v46 = vmul.f32 1.442695, %v2790_v30 }
 0x972   : > { %3970 = vpow2.f32 %v2791_v46 }
 0x97c   : > { %v3971_v47 = vpop.eup %3970 }
 0x97d   : > { %v2793_v50 = vsel %vm2786_vm1, %v3971_v47, 0.0 }
 0x97e   : > { %2794 = vadd.xlane.f32.xlu0 %v2793_v50 }
 0xa0b   : > { %v2795_v52 = vpop.xlane.xlu0 %2794 }
 0xa0c   : > { %3972 = vrcp.f32 %v2795_v52 }
 0xa16   : > { %v3973_v53 = vpop.eup %3972 }
 0xa17   : > { %v2797_v54 = vmul.f32 %v3973_v53, %v2795_v52 }
 0xa19   : > { %v2798_v55 = vsub.f32 2.0, %v2797_v54 }
 0xa1b   : > { %v2799_v56 = vmul.f32 %v3973_v53, %v2798_v55 }
 0xa1d   : > { %v2800_v57 = vmul.f32 %v3971_v47, %v2799_v56 }
 0xa1f   : > { %2801 = vst.msk [vmem:[%s486_s30] sm:$0x1] %vm2786_vm1, %v2800_v57 }
 0xa20   : > { %3987 = shalt.err (!%p3984_p3)
}
 0xa21   : > { %s3988_s27 = scalar_lea.hbm %s5484_s0, 16  ;;  %s3992_s18 = scalar_lea.hbm %s5542_s15, 32 }
 0xa22   : > { %p3989_p4 = scmp.ne.s32.totalorder %s5484_s0, %s3988_s27  ;;  %p3993_p9 = scmp.lt.u32.totalorder %s5484_s0, %s5542_s15 }
 0xa23   : > { %p3994_p10 = scmp.lt.u32.totalorder %s3992_s18, %s3988_s27  ;;  %p3996_p12 = scmp.lt.u32.totalorder %s3988_s27, %s5484_s0 }
 0xa24   : > { %p3990_p7 = pnand %p3989_p4, %p4161_p5 }
 0xa25   : > { %p3995_p11 = por %p3994_p10, %p3993_p9 }
 0xa26   : > { %p3991_p8 = pneg %p3990_p7 }
 0xa27   : > { %p3997_p13 = por %p3996_p12, %p3995_p11 }
 0xa29   : > { %p3998_p0 = pnand %p3997_p13, %p3991_p8 }
 0xa2b   : > { %4001 = shalt.err (!%p3998_p0)
}
 0xa2c   : > { %3899 = dma.vmem_to_hbm [thread:$0]  (%p4161_p5), %s5486_s29, 16, %s5484_s0, %s2803_s17  }
 0xa2d PF: > { %s5559_s26 = sld [smem:[#allocation7_spill]]  ;;  %s5560_s16 = sld [smem:[#allocation5_spill]] }
 0xa33   : > { %p3905_p1 = scmp.ge.s32.totalorder %s5559_s26, 2  ;;  %s2827_s23 = sand.u32 1, %s5560_s16  }
 0xa34   : > { %s2828_s20 = scalar_lea.sflag [#allocation3], %s2827_s23 }
 0xa35   : > { %p3902_p2 = pnand %p3905_p1, %p4165_p6 }
 0xa37   : > { %4019 = dma.done.wait (!%p3902_p2), %s2828_s20, 16  }
 0xa38   : > { %4021 = vsyncadd (!%p3902_p2), %s2828_s20, 4294967280  ;;  %s5562_s21 = sld [smem:[#allocation8_spill]]  ;;  %s5563_s27 = sld [smem:[#allocation6_spill]] }
 0xa39   : > { %s5564_s20 = sld [smem:[#allocation9_spill]]  ;;  %s5565_s18 = smov %s4028_s19 }
 0xa3e   : > { %p25_p3 = scmp.ge.s32.totalorder %s5562_s21, 4   ;;  %s5566_s19 = smov %s5563_s27 }
 0xa40   :  { %27 = sbr.rel (!%p25_p3) target bundleno = 5 (0x5), region = 127 }
 0xa47   :  { %2832 = vsyncpa [#allocation3], 1 }
 0xa48   :  { %2834 = vsyncpa [#allocation3 + $0x1], 1 }

</bundles_post_ra>
